<compile_context>
chip_gen: v7x
topology: tpu7x:2x2x1
jax: 0.10.0
libtpu: 0.0.40
codegen_flags: <defaults>
</compile_context>

<pallas_src>
import jax
import jax.numpy as jnp
import numpy as np
from jax import lax
from jax.experimental import pallas as pl
from jax.experimental.pallas import tpu as pltpu

N_HEADS = 16


# ----------------------------- kernel helpers ---------------------------------------


def _proj(x_b, w_ref, b_ref):
    # x_b: (H, T, D) activations broadcast over heads; w: (H, D, hd); b: (H, 1, hd).
    # One head-batched dot_general contracting the full model dim D.
    return jnp.einsum('htd,hde->hte', x_b, w_ref[...],
                      preferred_element_type=jnp.float32) + b_ref[...]


def _attention_core(q, k, v, wo_ref, bo_ref):
    # q/k/v: (H, T, hd) f32; q is pre-scaled (scale folded into Wq/bq host-side).
    H, T, _ = q.shape
    # Scores: one batched contraction over head_dim; trailing axes contracted directly,
    # so no per-head transpose is emitted.
    s = jnp.einsum('hte,hse->hts', q, k, preferred_element_type=jnp.float32)   # (H,T,T)
    row = lax.broadcasted_iota(jnp.int32, (T, T), 0)
    col = lax.broadcasted_iota(jnp.int32, (T, T), 1)
    s = jnp.where((row >= col)[None], s, -jnp.inf)       # causal mask, bcast over heads
    m = jnp.max(s, axis=-1, keepdims=True)
    p = jnp.exp(s - m)
    l = jnp.sum(p, axis=-1, keepdims=True)
    p = p * pl.reciprocal(l, approx=True)                # EUP reciprocal, not a divide
    # Context: head-batched PV matmul.
    ctx = jnp.einsum('hts,hse->hte', p, v, preferred_element_type=jnp.float32)  # (H,T,hd)
    # Output projection folded over heads: y = sum_h ctx_h @ Wo_h + bo.
    # Replaces concatenate(head_outs) + (T,D)@(D,D) — no lane-shuffle concat needed.
    yh = jnp.einsum('hte,hed->htd', ctx, wo_ref[...],
                    preferred_element_type=jnp.float32)                          # (H,T,D)
    return jnp.sum(yh, axis=0) + bo_ref[...]


def _mha_self_kernel(x_ref, wq_ref, bq_ref, wk_ref, bk_ref, wv_ref, bv_ref,
                     wo_ref, bo_ref, o_ref):
    # Self-attention: single activation input per grid step (1x DMA instead of 3x).
    x = x_ref[0]                                         # (T, D)
    T, D = x.shape
    H = wq_ref.shape[0]
    xb = jnp.broadcast_to(x, (H, T, D))                  # broadcast over leading head dim
    q = _proj(xb, wq_ref, bq_ref)
    k = _proj(xb, wk_ref, bk_ref)
    v = _proj(xb, wv_ref, bv_ref)
    y = _attention_core(q, k, v, wo_ref, bo_ref)
    o_ref[0] = y.astype(o_ref.dtype)


def _mha_cross_kernel(xq_ref, xk_ref, xv_ref, wq_ref, bq_ref, wk_ref, bk_ref,
                      wv_ref, bv_ref, wo_ref, bo_ref, o_ref):
    # General path: distinct Q/K/V activations (keeps full module semantics).
    T, D = xq_ref.shape[1], xq_ref.shape[2]
    H = wq_ref.shape[0]
    q = _proj(jnp.broadcast_to(xq_ref[0], (H, T, D)), wq_ref, bq_ref)
    k = _proj(jnp.broadcast_to(xk_ref[0], (H, T, D)), wk_ref, bk_ref)
    v = _proj(jnp.broadcast_to(xv_ref[0], (H, T, D)), wv_ref, bv_ref)
    y = _attention_core(q, k, v, wo_ref, bo_ref)
    o_ref[0] = y.astype(o_ref.dtype)


# ----------------------------- wrapper -----------------------------------------------


def _head_params(params, D):
    # Host-side (plain XLA, outside the kernel) repack of the Linear weights into
    # head-batched layout, with the softmax scale folded into the Q projection.
    wq, bq, wk, bk, wv, bv, wo, bo = params
    H = N_HEADS
    hd = D // H
    scale = 1.0 / (D ** 0.5)   # NOTE: reference scales by sqrt(model dim), not head_dim.

    def split_cols(w):         # (D, D) -> (H, D, hd); head h gets cols [h*hd, (h+1)*hd)
        return w.reshape(D, H, hd).transpose(1, 0, 2)

    def split_bias(b):         # (1, D) -> (H, 1, hd)
        return b.reshape(1, H, hd).transpose(1, 0, 2)

    wq_h = split_cols(wq * scale)
    bq_h = split_bias(bq * scale)
    wk_h = split_cols(wk)
    bk_h = split_bias(bk)
    wv_h = split_cols(wv)
    bv_h = split_bias(bv)
    wo_h = wo.reshape(H, hd, D)        # rows of Wo are (head, head_dim)-major already
    return wq_h, bq_h, wk_h, bk_h, wv_h, bv_h, wo_h, bo


def multi_head_attention(Qx, Kx, Vx, params):
    B, T, D = Qx.shape
    H = N_HEADS
    hd = D // H
    wq_h, bq_h, wk_h, bk_h, wv_h, bv_h, wo_h, bo = _head_params(params, D)

    act_spec = pl.BlockSpec((1, T, D), lambda b: (b, 0, 0))
    # Constant index_map => weight blocks are not re-DMA'd between consecutive grid steps.
    # (For large D, single-buffering them via pipeline_mode would also halve their VMEM.)
    w_spec = pl.BlockSpec((H, D, hd), lambda b: (0, 0, 0))
    b_spec = pl.BlockSpec((H, 1, hd), lambda b: (0, 0, 0))
    wo_spec = pl.BlockSpec((H, hd, D), lambda b: (0, 0, 0))
    bo_spec = pl.BlockSpec((1, D), lambda b: (0, 0))

    cp = pltpu.CompilerParams(dimension_semantics=("parallel",))
    out_shape = jax.ShapeDtypeStruct((B, T, D), Qx.dtype)

    if Qx is Kx and Kx is Vx:
        # Self-attention fast path: de-duplicates the 3x identical activation DMA.
        return pl.pallas_call(
            _mha_self_kernel,
            out_shape=out_shape,
            grid_spec=pltpu.PrefetchScalarGridSpec(
                num_scalar_prefetch=0,
                grid=(B,),
                in_specs=[act_spec,
                          w_spec, b_spec, w_spec, b_spec, w_spec, b_spec,
                          wo_spec, bo_spec],
                out_specs=act_spec,
            ),
            compiler_params=cp,
        )(Qx, wq_h, bq_h, wk_h, bk_h, wv_h, bv_h, wo_h, bo)

    return pl.pallas_call(
        _mha_cross_kernel,
        out_shape=out_shape,
        grid_spec=pltpu.PrefetchScalarGridSpec(
            num_scalar_prefetch=0,
            grid=(B,),
            in_specs=[act_spec, act_spec, act_spec,
                      w_spec, b_spec, w_spec, b_spec, w_spec, b_spec,
                      wo_spec, bo_spec],
            out_specs=act_spec,
        ),
        compiler_params=cp,
    )(Qx, Kx, Vx, wq_h, bq_h, wk_h, bk_h, wv_h, bv_h, wo_h, bo)


# ----------------------------- reference & test --------------------------------------


def reference(Qx, Kx, Vx, params):
    # Pure-JAX reference mirroring the PyTorch forward, for verification.
    wq, bq, wk, bk, wv, bv, wo, bo = params
    B, T, D = Qx.shape
    hd = D // N_HEADS
    q = Qx @ wq + bq
    k = Kx @ wk + bk
    v = Vx @ wv + bv
    q = q.reshape(B, T, N_HEADS, hd).transpose(0, 2, 1, 3)
    k = k.reshape(B, T, N_HEADS, hd).transpose(0, 2, 1, 3)
    v = v.reshape(B, T, N_HEADS, hd).transpose(0, 2, 1, 3)
    s = jnp.einsum('bntd,bnsd->bnts', q, k) / (D ** 0.5)
    mask = jnp.tril(jnp.ones((T, T)))
    s = jnp.where(mask == 0, -jnp.inf, s)
    p = jax.nn.softmax(s, axis=-1)
    o = jnp.einsum('bnts,bnsd->bntd', p, v)
    o = o.transpose(0, 2, 1, 3).reshape(B, T, D)
    return o @ wo + bo


def _linear_params(key, d_in, d_out):
    # Deterministic init mimicking torch.nn.Linear (uniform +/- 1/sqrt(d_in)).
    k1, k2 = jax.random.split(key)
    bound = 1.0 / np.sqrt(d_in)
    w = jax.random.uniform(k1, (d_in, d_out), jnp.float32, -bound, bound)
    b = jax.random.uniform(k2, (1, d_out), jnp.float32, -bound, bound)
    return w, b


if __name__ == "__main__":
    B, T, D = 2, 8, 32   # n_heads=16 -> head_dim=2
    key = jax.random.PRNGKey(0)
    keys = jax.random.split(key, 7)
    X = jax.random.normal(keys[0], (B, T, D), jnp.float32)
    K2 = jax.random.normal(keys[5], (B, T, D), jnp.float32)
    V2 = jax.random.normal(keys[6], (B, T, D), jnp.float32)

    wq, bq = _linear_params(keys[1], D, D)
    wk, bk = _linear_params(keys[2], D, D)
    wv, bv = _linear_params(keys[3], D, D)
    wo, bo = _linear_params(keys[4], D, D)
    params = (wq, bq, wk, bk, wv, bv, wo, bo)

    # Self-attention path (matches attn(X, X, X) in the driver).
    out_self = multi_head_attention(X, X, X, params)
    jax.block_until_ready(out_self)
    ref_self = reference(X, X, X, params)
    # Tolerance relaxed vs f32-exact because softmax uses the approx EUP reciprocal.
    np.testing.assert_allclose(np.asarray(out_self), np.asarray(ref_self),
                               rtol=2e-3, atol=2e-3)

    # General (distinct Q/K/V) path.
    out_cross = multi_head_attention(X, K2, V2, params)
    jax.block_until_ready(out_cross)
    ref_cross = reference(X, K2, V2, params)
    np.testing.assert_allclose(np.asarray(out_cross), np.asarray(ref_cross),
                               rtol=2e-3, atol=2e-3)

    print("KERNEL_OK")
</pallas_src>

<mosaic_0001>
module attributes {stable_mosaic.version = 11 : i64} {
  func.func @_mha_self_kernel(%arg0: i32, %arg1: memref<1x8x32xf32, #tpu.memory_space<vmem>>, %arg2: memref<16x32x2xf32, #tpu.memory_space<vmem>>, %arg3: memref<16x1x2xf32, #tpu.memory_space<vmem>>, %arg4: memref<16x32x2xf32, #tpu.memory_space<vmem>>, %arg5: memref<16x1x2xf32, #tpu.memory_space<vmem>>, %arg6: memref<16x32x2xf32, #tpu.memory_space<vmem>>, %arg7: memref<16x1x2xf32, #tpu.memory_space<vmem>>, %arg8: memref<16x2x32xf32, #tpu.memory_space<vmem>>, %arg9: memref<1x32xf32, #tpu.memory_space<vmem>>, %arg10: memref<1x8x32xf32, #tpu.memory_space<vmem>>) attributes {dimension_semantics = [#tpu.dimension_semantics<parallel>], iteration_bounds = array<i64: 2>, scalar_prefetch = 0 : i64, scratch_operands = 0 : i64, tpu.core_type = #tpu.core_type<tc>, window_params = [{transform_indices = @transform_0, window_bounds = array<i64: 1, 8, 32>}, {pipeline_mode = #tpu.pipeline_mode<synchronous>, transform_indices = @transform_1, window_bounds = array<i64: 16, 32, 2>}, {pipeline_mode = #tpu.pipeline_mode<synchronous>, transform_indices = @transform_2, window_bounds = array<i64: 16, 1, 2>}, {pipeline_mode = #tpu.pipeline_mode<synchronous>, transform_indices = @transform_3, window_bounds = array<i64: 16, 32, 2>}, {pipeline_mode = #tpu.pipeline_mode<synchronous>, transform_indices = @transform_4, window_bounds = array<i64: 16, 1, 2>}, {pipeline_mode = #tpu.pipeline_mode<synchronous>, transform_indices = @transform_5, window_bounds = array<i64: 16, 32, 2>}, {pipeline_mode = #tpu.pipeline_mode<synchronous>, transform_indices = @transform_6, window_bounds = array<i64: 16, 1, 2>}, {pipeline_mode = #tpu.pipeline_mode<synchronous>, transform_indices = @transform_7, window_bounds = array<i64: 16, 2, 32>}, {pipeline_mode = #tpu.pipeline_mode<synchronous>, transform_indices = @transform_8, window_bounds = array<i64: 1, 32>}, {transform_indices = @transform_9, window_bounds = array<i64: 1, 8, 32>}]} {
    %c0 = arith.constant 0 : index
    %c0_0 = arith.constant 0 : index
    %c0_1 = arith.constant 0 : index
    %0 = vector.load %arg1[%c0, %c0_0, %c0_1] : memref<1x8x32xf32, #tpu.memory_space<vmem>>, vector<1x8x32xf32>
    %1 = vector.shape_cast %0 : vector<1x8x32xf32> to vector<8x32xf32>
    %2 = vector.shape_cast %1 : vector<8x32xf32> to vector<1x8x32xf32>
    %3 = vector.broadcast %2 : vector<1x8x32xf32> to vector<16x8x32xf32>
    %c0_2 = arith.constant 0 : index
    %c0_3 = arith.constant 0 : index
    %c0_4 = arith.constant 0 : index
    %4 = vector.load %arg2[%c0_2, %c0_3, %c0_4] : memref<16x32x2xf32, #tpu.memory_space<vmem>>, vector<16x32x2xf32>
    "tpu.trace_start"() <{level = 10 : i32, message = "htd,hde->hte"}> : () -> ()
    %cst = arith.constant dense<0.000000e+00> : vector<16x8x2xf32>
    %5 = tpu.matmul %3, %4, %cst {dimension_numbers = #tpu.dot_dimension_numbers<[2], [1], [1], [2], [0, 0, 0, 1, 1, 2], [0], [0]>} : vector<16x8x32xf32>, vector<16x32x2xf32>, vector<16x8x2xf32> -> vector<16x8x2xf32>
    "tpu.trace_stop"() : () -> ()
    %c0_5 = arith.constant 0 : index
    %c0_6 = arith.constant 0 : index
    %c0_7 = arith.constant 0 : index
    %6 = vector.load %arg3[%c0_5, %c0_6, %c0_7] : memref<16x1x2xf32, #tpu.memory_space<vmem>>, vector<16x1x2xf32>
    %7 = vector.broadcast %6 : vector<16x1x2xf32> to vector<16x8x2xf32>
    %8 = arith.addf %5, %7 : vector<16x8x2xf32>
    %c0_8 = arith.constant 0 : index
    %c0_9 = arith.constant 0 : index
    %c0_10 = arith.constant 0 : index
    %9 = vector.load %arg4[%c0_8, %c0_9, %c0_10] : memref<16x32x2xf32, #tpu.memory_space<vmem>>, vector<16x32x2xf32>
    "tpu.trace_start"() <{level = 10 : i32, message = "htd,hde->hte"}> : () -> ()
    %cst_11 = arith.constant dense<0.000000e+00> : vector<16x8x2xf32>
    %10 = tpu.matmul %3, %9, %cst_11 {dimension_numbers = #tpu.dot_dimension_numbers<[2], [1], [1], [2], [0, 0, 0, 1, 1, 2], [0], [0]>} : vector<16x8x32xf32>, vector<16x32x2xf32>, vector<16x8x2xf32> -> vector<16x8x2xf32>
    "tpu.trace_stop"() : () -> ()
    %c0_12 = arith.constant 0 : index
    %c0_13 = arith.constant 0 : index
    %c0_14 = arith.constant 0 : index
    %11 = vector.load %arg5[%c0_12, %c0_13, %c0_14] : memref<16x1x2xf32, #tpu.memory_space<vmem>>, vector<16x1x2xf32>
    %12 = vector.broadcast %11 : vector<16x1x2xf32> to vector<16x8x2xf32>
    %13 = arith.addf %10, %12 : vector<16x8x2xf32>
    %c0_15 = arith.constant 0 : index
    %c0_16 = arith.constant 0 : index
    %c0_17 = arith.constant 0 : index
    %14 = vector.load %arg6[%c0_15, %c0_16, %c0_17] : memref<16x32x2xf32, #tpu.memory_space<vmem>>, vector<16x32x2xf32>
    "tpu.trace_start"() <{level = 10 : i32, message = "htd,hde->hte"}> : () -> ()
    %cst_18 = arith.constant dense<0.000000e+00> : vector<16x8x2xf32>
    %15 = tpu.matmul %3, %14, %cst_18 {dimension_numbers = #tpu.dot_dimension_numbers<[2], [1], [1], [2], [0, 0, 0, 1, 1, 2], [0], [0]>} : vector<16x8x32xf32>, vector<16x32x2xf32>, vector<16x8x2xf32> -> vector<16x8x2xf32>
    "tpu.trace_stop"() : () -> ()
    %c0_19 = arith.constant 0 : index
    %c0_20 = arith.constant 0 : index
    %c0_21 = arith.constant 0 : index
    %16 = vector.load %arg7[%c0_19, %c0_20, %c0_21] : memref<16x1x2xf32, #tpu.memory_space<vmem>>, vector<16x1x2xf32>
    %17 = vector.broadcast %16 : vector<16x1x2xf32> to vector<16x8x2xf32>
    %18 = arith.addf %15, %17 : vector<16x8x2xf32>
    "tpu.trace_start"() <{level = 10 : i32, message = "hte,hse->hts"}> : () -> ()
    %cst_22 = arith.constant dense<0.000000e+00> : vector<16x8x8xf32>
    %19 = tpu.matmul %8, %13, %cst_22 {dimension_numbers = #tpu.dot_dimension_numbers<[2], [2], [1], [1], [0, 0, 0, 1, 1, 1], [0], [0]>} : vector<16x8x2xf32>, vector<16x8x2xf32>, vector<16x8x8xf32> -> vector<16x8x8xf32>
    "tpu.trace_stop"() : () -> ()
    %20 = tpu.iota {dimensions = array<i32: 0>} : vector<8x8xi32>
    %21 = tpu.iota {dimensions = array<i32: 1>} : vector<8x8xi32>
    %22 = arith.cmpi sge, %20, %21 : vector<8x8xi32>
    %23 = vector.shape_cast %22 : vector<8x8xi1> to vector<1x8x8xi1>
    %cst_23 = arith.constant 0xFF800000 : f32
    %24 = vector.shape_cast %23 : vector<1x8x8xi1> to vector<1x8x8xi1>
    %25 = vector.broadcast %24 : vector<1x8x8xi1> to vector<16x8x8xi1>
    %26 = vector.broadcast %cst_23 : f32 to vector<16x8x8xf32>
    %27 = arith.select %25, %19, %26 : vector<16x8x8xi1>, vector<16x8x8xf32>
    %cst_24 = arith.constant dense<0xFF800000> : vector<16x8xf32>
    %28 = vector.multi_reduction <maximumf>, %27, %cst_24 [2] : vector<16x8x8xf32> to vector<16x8xf32>
    %29 = vector.shape_cast %28 : vector<16x8xf32> to vector<16x8x1xf32>
    %30 = vector.broadcast %29 : vector<16x8x1xf32> to vector<16x8x8xf32>
    %31 = arith.subf %27, %30 : vector<16x8x8xf32>
    %32 = math.exp %31 : vector<16x8x8xf32>
    %cst_25 = arith.constant dense<0.000000e+00> : vector<16x8xf32>
    %33 = vector.multi_reduction <add>, %32, %cst_25 [2] : vector<16x8x8xf32> to vector<16x8xf32>
    %34 = vector.shape_cast %33 : vector<16x8xf32> to vector<16x8x1xf32>
    %35 = tpu.reciprocal %34 {approx = true} : vector<16x8x1xf32> -> vector<16x8x1xf32>
    %36 = vector.broadcast %35 : vector<16x8x1xf32> to vector<16x8x8xf32>
    %37 = arith.mulf %32, %36 : vector<16x8x8xf32>
    "tpu.trace_start"() <{level = 10 : i32, message = "hts,hse->hte"}> : () -> ()
    %cst_26 = arith.constant dense<0.000000e+00> : vector<16x8x2xf32>
    %38 = tpu.matmul %37, %18, %cst_26 {dimension_numbers = #tpu.dot_dimension_numbers<[2], [1], [1], [2], [0, 0, 0, 1, 1, 2], [0], [0]>} : vector<16x8x8xf32>, vector<16x8x2xf32>, vector<16x8x2xf32> -> vector<16x8x2xf32>
    "tpu.trace_stop"() : () -> ()
    %c0_27 = arith.constant 0 : index
    %c0_28 = arith.constant 0 : index
    %c0_29 = arith.constant 0 : index
    %39 = vector.load %arg8[%c0_27, %c0_28, %c0_29] : memref<16x2x32xf32, #tpu.memory_space<vmem>>, vector<16x2x32xf32>
    "tpu.trace_start"() <{level = 10 : i32, message = "hte,hed->htd"}> : () -> ()
    %cst_30 = arith.constant dense<0.000000e+00> : vector<16x8x32xf32>
    %40 = tpu.matmul %38, %39, %cst_30 {dimension_numbers = #tpu.dot_dimension_numbers<[2], [1], [1], [2], [0, 0, 0, 1, 1, 2], [0], [0]>} : vector<16x8x2xf32>, vector<16x2x32xf32>, vector<16x8x32xf32> -> vector<16x8x32xf32>
    "tpu.trace_stop"() : () -> ()
    %cst_31 = arith.constant dense<0.000000e+00> : vector<8x32xf32>
    %41 = vector.multi_reduction <add>, %40, %cst_31 [0] : vector<16x8x32xf32> to vector<8x32xf32>
    %c0_32 = arith.constant 0 : index
    %c0_33 = arith.constant 0 : index
    %42 = vector.load %arg9[%c0_32, %c0_33] : memref<1x32xf32, #tpu.memory_space<vmem>>, vector<1x32xf32>
    %43 = vector.broadcast %42 : vector<1x32xf32> to vector<8x32xf32>
    %44 = arith.addf %41, %43 : vector<8x32xf32>
    %c0_34 = arith.constant 0 : index
    %c0_35 = arith.constant 0 : index
    %c0_36 = arith.constant 0 : index
    %45 = vector.load %arg10[%c0_34, %c0_35, %c0_36] : memref<1x8x32xf32, #tpu.memory_space<vmem>>, vector<1x8x32xf32>
    %46 = vector.shape_cast %45 : vector<1x8x32xf32> to vector<8x32xf32>
    %47 = vector.shape_cast %44 : vector<8x32xf32> to vector<1x8x32xf32>
    tpu.vector_store %arg10[%c0_34, %c0_35, %c0_36], %47 {strides = array<i32>} : memref<1x8x32xf32, #tpu.memory_space<vmem>>, vector<1x8x32xf32>,
    return
  }
  func.func @transform_0(%arg0: i32) -> (i32, i32, i32) {
    %c0_i32 = arith.constant 0 : i32
    %c0_i32_0 = arith.constant 0 : i32
    %c0_i32_1 = arith.constant 0 : i32
    return %arg0, %c0_i32, %c0_i32_0 : i32, i32, i32
  }
  func.func @transform_1(%arg0: i32) -> (i32, i32, i32) {
    %c0_i32 = arith.constant 0 : i32
    %c0_i32_0 = arith.constant 0 : i32
    %c0_i32_1 = arith.constant 0 : i32
    %c0_i32_2 = arith.constant 0 : i32
    return %c0_i32, %c0_i32_0, %c0_i32_1 : i32, i32, i32
  }
  func.func @transform_2(%arg0: i32) -> (i32, i32, i32) {
    %c0_i32 = arith.constant 0 : i32
    %c0_i32_0 = arith.constant 0 : i32
    %c0_i32_1 = arith.constant 0 : i32
    %c0_i32_2 = arith.constant 0 : i32
    return %c0_i32, %c0_i32_0, %c0_i32_1 : i32, i32, i32
  }
  func.func @transform_3(%arg0: i32) -> (i32, i32, i32) {
    %c0_i32 = arith.constant 0 : i32
    %c0_i32_0 = arith.constant 0 : i32
    %c0_i32_1 = arith.constant 0 : i32
    %c0_i32_2 = arith.constant 0 : i32
    return %c0_i32, %c0_i32_0, %c0_i32_1 : i32, i32, i32
  }
  func.func @transform_4(%arg0: i32) -> (i32, i32, i32) {
    %c0_i32 = arith.constant 0 : i32
    %c0_i32_0 = arith.constant 0 : i32
    %c0_i32_1 = arith.constant 0 : i32
    %c0_i32_2 = arith.constant 0 : i32
    return %c0_i32, %c0_i32_0, %c0_i32_1 : i32, i32, i32
  }
  func.func @transform_5(%arg0: i32) -> (i32, i32, i32) {
    %c0_i32 = arith.constant 0 : i32
    %c0_i32_0 = arith.constant 0 : i32
    %c0_i32_1 = arith.constant 0 : i32
    %c0_i32_2 = arith.constant 0 : i32
    return %c0_i32, %c0_i32_0, %c0_i32_1 : i32, i32, i32
  }
  func.func @transform_6(%arg0: i32) -> (i32, i32, i32) {
    %c0_i32 = arith.constant 0 : i32
    %c0_i32_0 = arith.constant 0 : i32
    %c0_i32_1 = arith.constant 0 : i32
    %c0_i32_2 = arith.constant 0 : i32
    return %c0_i32, %c0_i32_0, %c0_i32_1 : i32, i32, i32
  }
  func.func @transform_7(%arg0: i32) -> (i32, i32, i32) {
    %c0_i32 = arith.constant 0 : i32
    %c0_i32_0 = arith.constant 0 : i32
    %c0_i32_1 = arith.constant 0 : i32
    %c0_i32_2 = arith.constant 0 : i32
    return %c0_i32, %c0_i32_0, %c0_i32_1 : i32, i32, i32
  }
  func.func @transform_8(%arg0: i32) -> (i32, i32) {
    %c0_i32 = arith.constant 0 : i32
    %c0_i32_0 = arith.constant 0 : i32
    %c0_i32_1 = arith.constant 0 : i32
    return %c0_i32, %c0_i32_0 : i32, i32
  }
  func.func @transform_9(%arg0: i32) -> (i32, i32, i32) {
    %c0_i32 = arith.constant 0 : i32
    %c0_i32_0 = arith.constant 0 : i32
    %c0_i32_1 = arith.constant 0 : i32
    return %arg0, %c0_i32, %c0_i32_0 : i32, i32, i32
  }
}

</mosaic_0001>

<bundles_post_ra>
// kernel: tpu_custom_call.1
= control target key start
LH: loop header
LB: loop body
LE: loop exit
PB: predicated region body
PF: predicated region fallthrough
CT: control target
= control target key end

     0   :  { %14 = vsyncpa [#allocation3], 0  ;;  %s11630_s0 = inlined_call_operand.vmem [shape: f32[2,8,32], index: 0, kind: input, shape index: {}]   ;;  %s11631_s1 = inlined_call_operand.vmem [shape: f32[16,32,2], index: 1, kind: input, shape index: {}]   ;;  %s11632_s2 = inlined_call_operand.vmem [shape: f32[16,1,2], index: 2, kind: input, shape index: {}]   ;;  %s11633_s3 = inlined_call_operand.vmem [shape: f32[16,32,2], index: 3, kind: input, shape index: {}]   ;;  %s11634_s4 = inlined_call_operand.vmem [shape: f32[16,1,2], index: 4, kind: input, shape index: {}]   ;;  %s11635_s5 = inlined_call_operand.vmem [shape: f32[16,32,2], index: 5, kind: input, shape index: {}]   ;;  %s11636_s6 = inlined_call_operand.vmem [shape: f32[16,1,2], index: 6, kind: input, shape index: {}]   ;;  %s11637_s7 = inlined_call_operand.vmem [shape: f32[16,2,32], index: 7, kind: input, shape index: {}]   ;;  %s11638_s8 = inlined_call_operand.vmem [shape: f32[1,32], index: 8, kind: input, shape index: {}]   ;;  %s11639_s9 = inlined_call_operand.hbm [shape: f32[2,8,32], index: 9, kind: output, shape index: {}]  }
   0x1   :  { %16 = vsyncpa [#allocation3 + $0x1], 0  ;;  %s9956_s30 = smov 0   ;;  %s9958_s10 = smov 0  }
   0x2   :  { %s9960_s11 = smov 0   ;;  %s9962_s12 = smov 0  }
   0x3 LB: > { %s9977_s13 = sadd.s32 4294967295, %s9900_s12   ;;  %s8152_s14 = sadd.s32 4294967294, %s9900_s12   ;;  %s9900_s12 = sphi %s9962_s12, %s11647_s12   ;;  %s9896_s11 = sphi %s9960_s11, %s11646_s11   ;;  %s9892_s10 = sphi %s9958_s10, %s11645_s10   ;;  %s9888_s30 = sphi %s9956_s30, %s11644_s30  }
   0x4   : > { %s9981_s15 = sadd.s32 1, %s9900_s12   ;;  %s223_s16 = sadd.s32 1, %s9896_s11 }
   0x5   : > { %s220_s17 = ssub.s32 %s9900_s12, %s9981_s15  ;;  %p233_p0 = scmp.ne.s32.totalorder %s9896_s11, %s9892_s10 }
   0x6   : > { %p221_p1 = scmp.eq.s32.totalorder %s220_s17, 0  ;;  %p234_p2 = scmp.eq.s32.totalorder %s9977_s13, 1 }
   0x7   : > { %p239_p3 = scmp.ne.s32.totalorder %s9892_s10, %s9888_s30  ;;  %p240_p4 = scmp.eq.s32.totalorder %s8152_s14, 1 }
   0x8   : > { %s9992_s18 = scalar_select %p221_p1, %s9896_s11, %s223_s16  }
   0x9   : > { %p9994_p5 = por %p234_p2, %p233_p0  ;;  %p9998_p6 = por %p240_p4, %p239_p3 }
   0xa   : > { %p8155_p7 = scmp.ge.s32.totalorder %s9900_s12, 1  ;;  %p289_p8 = scmp.lt.s32.totalorder %s9900_s12, 3 }
   0xc   : > { %p290_p9 = pnand %p8155_p7, %p289_p8 }
   0xd   : > { %v329_v0 = vld [vmem:[%s11631_s1] sm:$0xff] (!%p290_p9)  ;;  %v330_v1 = vld [vmem:[%s11631_s1 + $0x8] sm:$0xff] (!%p290_p9)  ;;  %v9902_v3 = vmov (!%p290_p9), 0.0|0.0   ;;  %v331_v6 = vld [vmem:[%s11631_s1 + $0x10] sm:$0xff] (!%p290_p9)  ;;  %p324_p10 = scmp.lt.s32.totalorder (!%p290_p9), %s9977_s13, 1  ;;  %vm9903_vm0 = vmmov (!%p290_p9), 0  }
   0xe   : > { %293 = sbr.rel (%p290_p9) target bundleno = 1335 (0x537), region = 56  ;;  %v333_v2 = vld [vmem:[%s11631_s1 + $0x20] sm:$0xff] (!%p290_p9)  ;;  %9443 = vmatprep.subr.bf16.mxu0 (!%p290_p9), %v9902_v3  ;;  %9449 = vmatprep.subr.bf16.mxu1 (!%p290_p9), %v9902_v3  ;;  %v9444_v4 = vpack.c.bf16 (!%p290_p9), %v330_v1, %v329_v0  ;;  %v334_v5 = vld [vmem:[%s11631_s1 + $0x28] sm:$0xff] (!%p290_p9)  ;;  %v332_v7 = vld [vmem:[%s11631_s1 + $0x18] sm:$0xff] (!%p290_p9)  ;;  %v9904_v11 = vmov (!%p290_p9), 0.0   ;;  %vm505_vm1 = vcmask (!%p290_p9), 261120  }
   0xf   : > { %v9450_v8 = vpack.c.bf16 (!%p290_p9), %v334_v5, %v333_v2  ;;  %v335_v9 = vld [vmem:[%s11631_s1 + $0x30] sm:$0xff] (!%p290_p9)  ;;  %v336_v10 = vld [vmem:[%s11631_s1 + $0x38] sm:$0xff] (!%p290_p9)  ;;  %8683 = vmatprep.mubr.msk.f32.mxu0 (!%p290_p9), %vm9903_vm0, %v9904_v11  ;;  %8694 = vmatprep.mubr.msk.f32.mxu1 (!%p290_p9), %vm9903_vm0, %v9904_v11  ;;  %v9447_v12 = vpack.c.bf16 (!%p290_p9), %v332_v7, %v331_v6  ;;  %v337_v14 = vld [vmem:[%s11631_s1 + $0x40] sm:$0xff] (!%p290_p9)  ;;  %vm4221_vm2 = vcmask (!%p290_p9), 15360   ;;  %vm5461_vm4 = vcmask (!%p290_p9), 64512   ;;  %s321_s29 = sand.u32 (!%p290_p9), 1, %s9892_s10  }
  0x10   : > { %9445 = vmatpush3.bf16.msra.mxu0 (!%p290_p9), %v9444_v4  ;;  %v9453_v13 = vpack.c.bf16 (!%p290_p9), %v336_v10, %v335_v9  ;;  %v338_v15 = vld [vmem:[%s11631_s1 + $0x48] sm:$0xff] (!%p290_p9)  ;;  %v341_v16 = vld [vmem:[%s11631_s1 + $0x60] sm:$0xff] (!%p290_p9)  ;;  %v339_v21 = vld [vmem:[%s11631_s1 + $0x50] sm:$0xff] (!%p290_p9)  ;;  %vm6825_vm5 = vcmask (!%p290_p9), 1041408   ;;  %s8080_s27 = scalar_lea.sflag (!%p290_p9), [#allocation3], %s321_s29 }
  0x11   : > { %9451 = vmatpush3.bf16.msra.mxu1 (!%p290_p9), %v9450_v8  ;;  %9446 = vmatprep.subr.bf16.mxu0 (!%p290_p9), %v9902_v3  ;;  %v342_v17 = vld [vmem:[%s11631_s1 + $0x68] sm:$0xff] (!%p290_p9)  ;;  %v9456_v19 = vpack.c.bf16 (!%p290_p9), %v338_v15, %v337_v14  ;;  %v340_v22 = vld [vmem:[%s11631_s1 + $0x58] sm:$0xff] (!%p290_p9)  ;;  %v343_v23 = vld [vmem:[%s11631_s1 + $0x70] sm:$0xff] (!%p290_p9) }
  0x12   : > { %9452 = vmatprep.subr.bf16.mxu1 (!%p290_p9), %v9902_v3  ;;  %v9462_v20 = vpack.c.bf16 (!%p290_p9), %v342_v17, %v341_v16  ;;  %v344_v24 = vld [vmem:[%s11631_s1 + $0x78] sm:$0xff] (!%p290_p9)  ;;  %v9459_v25 = vpack.c.bf16 (!%p290_p9), %v340_v22, %v339_v21  ;;  %v345_v27 = vld [vmem:[%s11631_s1 + $0x80] sm:$0xff] (!%p290_p9)  ;;  %v346_v28 = vld [vmem:[%s11631_s1 + $0x88] sm:$0xff] (!%p290_p9) }
  0x13   : > { %v9465_v26 = vpack.c.bf16 (!%p290_p9), %v344_v24, %v343_v23  ;;  %v349_v29 = vld [vmem:[%s11631_s1 + $0xa0] sm:$0xff] (!%p290_p9)  ;;  %v350_v30 = vld [vmem:[%s11631_s1 + $0xa8] sm:$0xff] (!%p290_p9)  ;;  %v9468_v31 = vpack.c.bf16 (!%p290_p9), %v346_v28, %v345_v27  ;;  %v347_v33 = vld [vmem:[%s11631_s1 + $0x90] sm:$0xff] (!%p290_p9) }
  0x14   : > { %9448 = vmatpush3.bf16.msra.mxu0 (!%p290_p9), %v9447_v12  ;;  %v9474_v32 = vpack.c.bf16 (!%p290_p9), %v350_v30, %v349_v29  ;;  %v348_v34 = vld [vmem:[%s11631_s1 + $0x98] sm:$0xff] (!%p290_p9)  ;;  %v351_v35 = vld [vmem:[%s11631_s1 + $0xb0] sm:$0xff] (!%p290_p9)  ;;  %v353_v39 = vld [vmem:[%s11631_s1 + $0xc0] sm:$0xff] (!%p290_p9) }
  0x15   : > { %s325_s25 = scalar_select %p324_p10, %s9977_s13, 1  ;;  %9454 = vmatpush3.bf16.msra.mxu1 %v9453_v13  ;;  %9455 = vmatprep.subr.bf16.mxu0 %v9902_v3  ;;  %v352_v36 = vld [vmem:[%s11631_s1 + $0xb8] sm:$0xff]  ;;  %v9471_v37 = vpack.c.bf16 %v348_v34, %v347_v33  ;;  %v354_v40 = vld [vmem:[%s11631_s1 + $0xc8] sm:$0xff]  ;;  %v357_v41 = vld [vmem:[%s11631_s1 + $0xe0] sm:$0xff] }
  0x16   : > { %9461 = vmatprep.subr.bf16.mxu1 %v9902_v3  ;;  %v9477_v38 = vpack.c.bf16 %v352_v36, %v351_v35  ;;  %v358_v42 = vld [vmem:[%s11631_s1 + $0xe8] sm:$0xff]  ;;  %v9480_v43 = vpack.c.bf16 %v354_v40, %v353_v39  ;;  %v355_v45 = vld [vmem:[%s11631_s1 + $0xd0] sm:$0xff]  ;;  %v356_v46 = vld [vmem:[%s11631_s1 + $0xd8] sm:$0xff] }
  0x17   : > { %s8157_s14 = sshll.u32 %s325_s25, 3  ;;  %v9486_v44 = vpack.c.bf16 %v358_v42, %v357_v41  ;;  %v359_v47 = vld [vmem:[%s11631_s1 + $0xf0] sm:$0xff]  ;;  %v360_v48 = vld [vmem:[%s11631_s1 + $0xf8] sm:$0xff]  ;;  %v9483_v49 = vpack.c.bf16 %v356_v46, %v355_v45  ;;  %v361_v51 = vld [vmem:[%s11631_s1 + $0x100] sm:$0xff] }
  0x18   : > { %s10053_s26 = scalar_lea.vmem %s11630_s0, %s8157_s14  ;;  %v9489_v50 = vpack.c.bf16 %v360_v48, %v359_v47  ;;  %v362_v52 = vld [vmem:[%s11631_s1 + $0x108] sm:$0xff]  ;;  %v365_v53 = vld [vmem:[%s11631_s1 + $0x120] sm:$0xff]  ;;  %v363_v57 = vld [vmem:[%s11631_s1 + $0x110] sm:$0xff]  ;;  %s8156_s14 = sshll.u32 %s321_s29, 3 }
  0x19   : > { %v10056_v18 = vld [vmem:[%s10053_s26] sm:$0xff]  ;;  %v366_v54 = vld [vmem:[%s11631_s1 + $0x128] sm:$0xff]  ;;  %v9492_v55 = vpack.c.bf16 %v362_v52, %v361_v51  ;;  %v364_v58 = vld [vmem:[%s11631_s1 + $0x118] sm:$0xff]  ;;  %s323_s21 = scalar_lea.vmem [#allocation2], %s8156_s14 }
  0x1a   : > { %8684 = vmatmul.mubr.msk.f32.vlgmr.msra.gmra.mrb[0].mxu0 %vm505_vm1, %v10056_v18  ;;  %8695 = vmatmul.mubr.msk.f32.vlgmr.msra.gmra.mrb[0].mxu1 %vm505_vm1, %v10056_v18  ;;  %v9498_v56 = vpack.c.bf16 %v366_v54, %v365_v53  ;;  %v367_v59 = vld [vmem:[%s11631_s1 + $0x130] sm:$0xff]  ;;  %v368_v60 = vld [vmem:[%s11631_s1 + $0x138] sm:$0xff]  ;;  %v9495_v61 = vpack.c.bf16 %v364_v58, %v363_v57  ;;  %v369_v63 = vld [vmem:[%s11631_s1 + $0x140] sm:$0xff]  ;;  %s8093_s22 = sshll.u32 %s323_s21, 4  ;;  %s11589_s22 = int_to_ptr.vmem [resolvable:$true] %s8093_s22 }
  0x1b   : > { %9457 = vmatpush3.bf16.msra.mxu0 %v9456_v19  ;;  %9463 = vmatpush3.bf16.msra.mxu1 %v9462_v20  ;;  %v9501_v62 = vpack.c.bf16 %v368_v60, %v367_v59  ;;  %v370_v0 = vld [vmem:[%s11631_s1 + $0x148] sm:$0xff]  ;;  %v373_v1 = vld [vmem:[%s11631_s1 + $0x160] sm:$0xff]  ;;  %v371_v6 = vld [vmem:[%s11631_s1 + $0x150] sm:$0xff]  ;;  %s9838_s28 = scalar_lea.vmem %s11589_s22, 128 }
  0x1c   : > { %9458 = vmatprep.subr.bf16.mxu0 %v9902_v3  ;;  %9464 = vmatprep.subr.bf16.mxu1 %v9902_v3  ;;  %v374_v2 = vld [vmem:[%s11631_s1 + $0x168] sm:$0xff]  ;;  %v9504_v4 = vpack.c.bf16 %v370_v0, %v369_v63  ;;  %v372_v7 = vld [vmem:[%s11631_s1 + $0x158] sm:$0xff]  ;;  %v375_v8 = vld [vmem:[%s11631_s1 + $0x170] sm:$0xff]  ;;  %p9839_p11 = scmp.ne.s32.totalorder %s11589_s22, %s9838_s28 }
  0x1d   : > { %8705 = vmatprep.mubr.msk.f32.mxu0 %vm9903_vm0, %v9904_v11  ;;  %8716 = vmatprep.mubr.msk.f32.mxu1 %vm9903_vm0, %v9904_v11  ;;  %v9510_v5 = vpack.c.bf16 %v374_v2, %v373_v1  ;;  %v376_v9 = vld [vmem:[%s11631_s1 + $0x178] sm:$0xff]  ;;  %v9507_v10 = vpack.c.bf16 %v372_v7, %v371_v6  ;;  %v377_v13 = vld [vmem:[%s11631_s1 + $0x180] sm:$0xff]  ;;  %v378_v14 = vld [vmem:[%s11631_s1 + $0x188] sm:$0xff] }
  0x1e   : > { %v9513_v12 = vpack.c.bf16 %v376_v9, %v375_v8  ;;  %v381_v15 = vld [vmem:[%s11631_s1 + $0x1a0] sm:$0xff]  ;;  %v382_v16 = vld [vmem:[%s11631_s1 + $0x1a8] sm:$0xff]  ;;  %v9516_v17 = vpack.c.bf16 %v378_v14, %v377_v13  ;;  %v379_v20 = vld [vmem:[%s11631_s1 + $0x190] sm:$0xff]  ;;  %p9840_p12 = pnand %p9839_p11, %p9994_p5 }
  0x1f   : > { %9460 = vmatpush3.bf16.msra.mxu0 %v9459_v25  ;;  %9466 = vmatpush3.bf16.msra.mxu1 %v9465_v26  ;;  %v9522_v19 = vpack.c.bf16 %v382_v16, %v381_v15  ;;  %v380_v21 = vld [vmem:[%s11631_s1 + $0x198] sm:$0xff]  ;;  %v383_v22 = vld [vmem:[%s11631_s1 + $0x1b0] sm:$0xff]  ;;  %v385_v26 = vld [vmem:[%s11631_s1 + $0x1c0] sm:$0xff] }
  0x20   : > { %9467 = vmatprep.subr.bf16.mxu0 %v9902_v3  ;;  %9473 = vmatprep.subr.bf16.mxu1 %v9902_v3  ;;  %v384_v23 = vld [vmem:[%s11631_s1 + $0x1b8] sm:$0xff]  ;;  %v9519_v24 = vpack.c.bf16 %v380_v21, %v379_v20  ;;  %v386_v27 = vld [vmem:[%s11631_s1 + $0x1c8] sm:$0xff]  ;;  %v389_v28 = vld [vmem:[%s11631_s1 + $0x1e0] sm:$0xff]  ;;  %p9841_p13 = pneg %p9840_p12 }
  0x21   : > { %v9525_v25 = vpack.c.bf16 %v384_v23, %v383_v22  ;;  %v390_v29 = vld [vmem:[%s11631_s1 + $0x1e8] sm:$0xff]  ;;  %v9528_v30 = vpack.c.bf16 %v386_v27, %v385_v26  ;;  %v388_v33 = vld [vmem:[%s11631_s1 + $0x1d8] sm:$0xff]  ;;  %v391_v34 = vld [vmem:[%s11631_s1 + $0x1f0] sm:$0xff] }
  0x22   : > { %8706 = vmatmul.mubr.msk.f32.vlgmr.msra.gmra.mrb[2].mxu0 %vm505_vm1, %v10056_v18  ;;  %8717 = vmatmul.mubr.msk.f32.vlgmr.msra.gmra.mrb[2].mxu1 %vm505_vm1, %v10056_v18  ;;  %v392_v35 = vld [vmem:[%s11631_s1 + $0x1f8] sm:$0xff]  ;;  %v1630_v39 = vld [vmem:[%s11633_s3 + $0x8] sm:$0xff]  ;;  %v1633_v40 = vld [vmem:[%s11633_s3 + $0x20] sm:$0xff] }
  0x23   : > { %9469 = vmatpush3.bf16.msra.mxu0 %v9468_v31  ;;  %9475 = vmatpush3.bf16.msra.mxu1 %v9474_v32  ;;  %v9534_v31 = vpack.c.bf16 %v390_v29, %v389_v28  ;;  %v387_v32 = vld [vmem:[%s11631_s1 + $0x1d0] sm:$0xff]  ;;  %v1634_v41 = vld [vmem:[%s11633_s3 + $0x28] sm:$0xff]  ;;  %v1632_v45 = vld [vmem:[%s11633_s3 + $0x18] sm:$0xff] }
  0x24   : > { %9470 = vmatprep.subr.bf16.mxu0 %v9902_v3  ;;  %9476 = vmatprep.subr.bf16.mxu1 %v9902_v3  ;;  %v9531_v36 = vpack.c.bf16 %v388_v33, %v387_v32  ;;  %v1635_v46 = vld [vmem:[%s11633_s3 + $0x30] sm:$0xff]  ;;  %v1636_v47 = vld [vmem:[%s11633_s3 + $0x38] sm:$0xff]  ;;  %v1638_v51 = vld [vmem:[%s11633_s3 + $0x48] sm:$0xff] }
  0x25   : > { %8727 = vmatprep.mubr.msk.f32.mxu0 %vm9903_vm0, %v9904_v11  ;;  %8738 = vmatprep.mubr.msk.f32.mxu1 %vm9903_vm0, %v9904_v11  ;;  %v1641_v52 = vld [vmem:[%s11633_s3 + $0x60] sm:$0xff]  ;;  %v1642_v53 = vld [vmem:[%s11633_s3 + $0x68] sm:$0xff]  ;;  %v1640_v57 = vld [vmem:[%s11633_s3 + $0x58] sm:$0xff] }
  0x26   : > { %v1643_v58 = vld [vmem:[%s11633_s3 + $0x70] sm:$0xff]  ;;  %v1644_v59 = vld [vmem:[%s11633_s3 + $0x78] sm:$0xff]  ;;  %v1646_v63 = vld [vmem:[%s11633_s3 + $0x88] sm:$0xff] }
  0x27   : > { %9472 = vmatpush3.bf16.msra.mxu0 %v9471_v37  ;;  %9478 = vmatpush3.bf16.msra.mxu1 %v9477_v38  ;;  %v9537_v37 = vpack.c.bf16 %v392_v35, %v391_v34  ;;  %v1629_v38 = vld [vmem:[%s11633_s3] sm:$0xff]  ;;  %v1650_v1 = vld [vmem:[%s11633_s3 + $0xa8] sm:$0xff]  ;;  %v1648_v6 = vld [vmem:[%s11633_s3 + $0x98] sm:$0xff] }
  0x28   : > { %9479 = vmatprep.subr.bf16.mxu0 %v9902_v3  ;;  %9485 = vmatprep.subr.bf16.mxu1 %v9902_v3  ;;  %v9540_v42 = vpack.c.bf16 %v1630_v39, %v1629_v38  ;;  %v1649_v0 = vld [vmem:[%s11633_s3 + $0xa0] sm:$0xff]  ;;  %v1651_v7 = vld [vmem:[%s11633_s3 + $0xb0] sm:$0xff]  ;;  %v1652_v8 = vld [vmem:[%s11633_s3 + $0xb8] sm:$0xff] }
  0x29   : > { %v1654_v13 = vld [vmem:[%s11633_s3 + $0xc8] sm:$0xff]  ;;  %v1657_v14 = vld [vmem:[%s11633_s3 + $0xe0] sm:$0xff]  ;;  %v1656_v20 = vld [vmem:[%s11633_s3 + $0xd8] sm:$0xff] }
  0x2a   : > { %8728 = vmatmul.mubr.msk.f32.vlgmr.msra.gmra.mrb[4].mxu0 %vm505_vm1, %v10056_v18  ;;  %8739 = vmatmul.mubr.msk.f32.vlgmr.msra.gmra.mrb[4].mxu1 %vm505_vm1, %v10056_v18  ;;  %v1658_v15 = vld [vmem:[%s11633_s3 + $0xe8] sm:$0xff]  ;;  %v1659_v21 = vld [vmem:[%s11633_s3 + $0xf0] sm:$0xff]  ;;  %v1660_v22 = vld [vmem:[%s11633_s3 + $0xf8] sm:$0xff] }
  0x2b   : > { %9481 = vmatpush3.bf16.msra.mxu0 %v9480_v43  ;;  %9487 = vmatpush3.bf16.msra.mxu1 %v9486_v44  ;;  %v9546_v43 = vpack.c.bf16 %v1634_v41, %v1633_v40  ;;  %v1631_v44 = vld [vmem:[%s11633_s3 + $0x10] sm:$0xff]  ;;  %v1662_v26 = vld [vmem:[%s11633_s3 + $0x108] sm:$0xff]  ;;  %v1665_v27 = vld [vmem:[%s11633_s3 + $0x120] sm:$0xff] }
  0x2c   : > { %9482 = vmatprep.subr.bf16.mxu0 %v9902_v3  ;;  %9488 = vmatprep.subr.bf16.mxu1 %v9902_v3  ;;  %v9543_v48 = vpack.c.bf16 %v1632_v45, %v1631_v44  ;;  %v1666_v28 = vld [vmem:[%s11633_s3 + $0x128] sm:$0xff]  ;;  %v1664_v32 = vld [vmem:[%s11633_s3 + $0x118] sm:$0xff]  ;;  %v1667_v33 = vld [vmem:[%s11633_s3 + $0x130] sm:$0xff] }
  0x2d   : > { %8749 = vmatprep.mubr.msk.f32.mxu0 %vm9903_vm0, %v9904_v11  ;;  %8760 = vmatprep.mubr.msk.f32.mxu1 %vm9903_vm0, %v9904_v11  ;;  %v1668_v34 = vld [vmem:[%s11633_s3 + $0x138] sm:$0xff]  ;;  %v1670_v38 = vld [vmem:[%s11633_s3 + $0x148] sm:$0xff]  ;;  %v1673_v39 = vld [vmem:[%s11633_s3 + $0x160] sm:$0xff] }
  0x2e   : > { %v1674_v40 = vld [vmem:[%s11633_s3 + $0x168] sm:$0xff]  ;;  %v1672_v44 = vld [vmem:[%s11633_s3 + $0x158] sm:$0xff]  ;;  %v1675_v45 = vld [vmem:[%s11633_s3 + $0x170] sm:$0xff] }
  0x2f   : > { %9484 = vmatpush3.bf16.msra.mxu0 %v9483_v49  ;;  %9490 = vmatpush3.bf16.msra.mxu1 %v9489_v50  ;;  %v9549_v49 = vpack.c.bf16 %v1636_v47, %v1635_v46  ;;  %v1637_v50 = vld [vmem:[%s11633_s3 + $0x40] sm:$0xff]  ;;  %v1676_v46 = vld [vmem:[%s11633_s3 + $0x178] sm:$0xff] }
  0x30   : > { %9491 = vmatprep.subr.bf16.mxu0 %v9902_v3  ;;  %9497 = vmatprep.subr.bf16.mxu1 %v9902_v3  ;;  %v9552_v54 = vpack.c.bf16 %v1638_v51, %v1637_v50  ;;  %v1678_v50 = vld [vmem:[%s11633_s3 + $0x188] sm:$0xff]  ;;  %v1681_v51 = vld [vmem:[%s11633_s3 + $0x1a0] sm:$0xff] }
  0x32   : > { %8750 = vmatmul.mubr.msk.f32.vlgmr.msra.gmra.mrb[6].mxu0 %vm505_vm1, %v10056_v18  ;;  %8761 = vmatmul.mubr.msk.f32.vlgmr.msra.gmra.mrb[6].mxu1 %vm505_vm1, %v10056_v18 }
  0x33   : > { %9493 = vmatpush3.bf16.msra.mxu0 %v9492_v55  ;;  %9499 = vmatpush3.bf16.msra.mxu1 %v9498_v56  ;;  %v9558_v55 = vpack.c.bf16 %v1642_v53, %v1641_v52  ;;  %v1639_v56 = vld [vmem:[%s11633_s3 + $0x50] sm:$0xff]  ;;  %v1682_v52 = vld [vmem:[%s11633_s3 + $0x1a8] sm:$0xff] }
  0x34   : > { %9494 = vmatprep.subr.bf16.mxu0 %v9902_v3  ;;  %9500 = vmatprep.subr.bf16.mxu1 %v9902_v3  ;;  %v9555_v60 = vpack.c.bf16 %v1640_v57, %v1639_v56  ;;  %v1680_v56 = vld [vmem:[%s11633_s3 + $0x198] sm:$0xff]  ;;  %v1683_v57 = vld [vmem:[%s11633_s3 + $0x1b0] sm:$0xff] }
  0x35   : > { %8771 = vmatprep.mubr.msk.f32.mxu0 %vm9903_vm0, %v9904_v11  ;;  %8782 = vmatprep.mubr.msk.f32.mxu1 %vm9903_vm0, %v9904_v11 }
  0x37   : > { %9496 = vmatpush3.bf16.msra.mxu0 %v9495_v61  ;;  %9502 = vmatpush3.bf16.msra.mxu1 %v9501_v62  ;;  %v9561_v61 = vpack.c.bf16 %v1644_v59, %v1643_v58  ;;  %v1645_v62 = vld [vmem:[%s11633_s3 + $0x80] sm:$0xff]  ;;  %v1684_v58 = vld [vmem:[%s11633_s3 + $0x1b8] sm:$0xff] }
  0x38   : > { %9503 = vmatprep.subr.bf16.mxu0 %v9902_v3  ;;  %9509 = vmatprep.subr.bf16.mxu1 %v9902_v3  ;;  %v9564_v2 = vpack.c.bf16 %v1646_v63, %v1645_v62  ;;  %v1686_v62 = vld [vmem:[%s11633_s3 + $0x1c8] sm:$0xff]  ;;  %v1689_v63 = vld [vmem:[%s11633_s3 + $0x1e0] sm:$0xff] }
  0x3a   : > { %8772 = vmatmul.mubr.msk.f32.vlgmr.msra.gmra.mrb[8].mxu0 %vm505_vm1, %v10056_v18  ;;  %8783 = vmatmul.mubr.msk.f32.vlgmr.msra.gmra.mrb[8].mxu1 %vm505_vm1, %v10056_v18 }
  0x3b   : > { %9505 = vmatpush3.bf16.msra.mxu0 %v9504_v4  ;;  %9511 = vmatpush3.bf16.msra.mxu1 %v9510_v5  ;;  %v9570_v4 = vpack.c.bf16 %v1650_v1, %v1649_v0  ;;  %v1647_v5 = vld [vmem:[%s11633_s3 + $0x90] sm:$0xff]  ;;  %v1690_v0 = vld [vmem:[%s11633_s3 + $0x1e8] sm:$0xff] }
  0x3c   : > { %9506 = vmatprep.subr.bf16.mxu0 %v9902_v3  ;;  %9512 = vmatprep.subr.bf16.mxu1 %v9902_v3  ;;  %v9567_v9 = vpack.c.bf16 %v1648_v6, %v1647_v5  ;;  %v1688_v5 = vld [vmem:[%s11633_s3 + $0x1d8] sm:$0xff]  ;;  %v1691_v6 = vld [vmem:[%s11633_s3 + $0x1f0] sm:$0xff] }
  0x3d   : > { %8793 = vmatprep.mubr.msk.f32.mxu0 %vm9903_vm0, %v9904_v11  ;;  %8804 = vmatprep.mubr.msk.f32.mxu1 %vm9903_vm0, %v9904_v11 }
  0x3f   : > { %9508 = vmatpush3.bf16.msra.mxu0 %v9507_v10  ;;  %9514 = vmatpush3.bf16.msra.mxu1 %v9513_v12  ;;  %v9573_v10 = vpack.c.bf16 %v1652_v8, %v1651_v7  ;;  %v1653_v12 = vld [vmem:[%s11633_s3 + $0xc0] sm:$0xff]  ;;  %v1692_v7 = vld [vmem:[%s11633_s3 + $0x1f8] sm:$0xff] }
  0x40   : > { %9515 = vmatprep.subr.bf16.mxu0 %v9902_v3  ;;  %9521 = vmatprep.subr.bf16.mxu1 %v9902_v3  ;;  %v9576_v16 = vpack.c.bf16 %v1654_v13, %v1653_v12  ;;  %v2926_v12 = vld [vmem:[%s11635_s5 + $0x8] sm:$0xff]  ;;  %v2929_v13 = vld [vmem:[%s11635_s5 + $0x20] sm:$0xff] }
  0x42   : > { %8794 = vmatmul.mubr.msk.f32.vlgmr.msra.gmra.mrb[10].mxu0 %vm505_vm1, %v10056_v18  ;;  %8805 = vmatmul.mubr.msk.f32.vlgmr.msra.gmra.mrb[10].mxu1 %vm505_vm1, %v10056_v18 }
  0x43   : > { %9517 = vmatpush3.bf16.msra.mxu0 %v9516_v17  ;;  %9523 = vmatpush3.bf16.msra.mxu1 %v9522_v19  ;;  %v9582_v17 = vpack.c.bf16 %v1658_v15, %v1657_v14  ;;  %v1655_v19 = vld [vmem:[%s11633_s3 + $0xd0] sm:$0xff]  ;;  %v2930_v14 = vld [vmem:[%s11635_s5 + $0x28] sm:$0xff] }
  0x44   : > { %9518 = vmatprep.subr.bf16.mxu0 %v9902_v3  ;;  %9524 = vmatprep.subr.bf16.mxu1 %v9902_v3  ;;  %v9579_v23 = vpack.c.bf16 %v1656_v20, %v1655_v19  ;;  %v2928_v19 = vld [vmem:[%s11635_s5 + $0x18] sm:$0xff]  ;;  %v2931_v20 = vld [vmem:[%s11635_s5 + $0x30] sm:$0xff] }
  0x45   : > { %8815 = vmatprep.mubr.msk.f32.mxu0 %vm9903_vm0, %v9904_v11  ;;  %8826 = vmatprep.mubr.msk.f32.mxu1 %vm9903_vm0, %v9904_v11 }
  0x47   : > { %9520 = vmatpush3.bf16.msra.mxu0 %v9519_v24  ;;  %9526 = vmatpush3.bf16.msra.mxu1 %v9525_v25  ;;  %v9585_v24 = vpack.c.bf16 %v1660_v22, %v1659_v21  ;;  %v1661_v25 = vld [vmem:[%s11633_s3 + $0x100] sm:$0xff]  ;;  %v2932_v21 = vld [vmem:[%s11635_s5 + $0x38] sm:$0xff] }
  0x48   : > { %9527 = vmatprep.subr.bf16.mxu0 %v9902_v3  ;;  %9533 = vmatprep.subr.bf16.mxu1 %v9902_v3  ;;  %v9588_v29 = vpack.c.bf16 %v1662_v26, %v1661_v25  ;;  %v2934_v25 = vld [vmem:[%s11635_s5 + $0x48] sm:$0xff]  ;;  %v2937_v26 = vld [vmem:[%s11635_s5 + $0x60] sm:$0xff] }
  0x4a   : > { %8816 = vmatmul.mubr.msk.f32.vlgmr.msra.gmra.mrb[12].mxu0 %vm505_vm1, %v10056_v18  ;;  %8827 = vmatmul.mubr.msk.f32.vlgmr.msra.gmra.mrb[12].mxu1 %vm505_vm1, %v10056_v18 }
  0x4b   : > { %9529 = vmatpush3.bf16.msra.mxu0 %v9528_v30  ;;  %9535 = vmatpush3.bf16.msra.mxu1 %v9534_v31  ;;  %v9594_v30 = vpack.c.bf16 %v1666_v28, %v1665_v27  ;;  %v1663_v31 = vld [vmem:[%s11633_s3 + $0x110] sm:$0xff]  ;;  %v2938_v27 = vld [vmem:[%s11635_s5 + $0x68] sm:$0xff] }
  0x4c   : > { %9530 = vmatprep.subr.bf16.mxu0 %v9902_v3  ;;  %9536 = vmatprep.subr.bf16.mxu1 %v9902_v3  ;;  %v9591_v35 = vpack.c.bf16 %v1664_v32, %v1663_v31  ;;  %v2936_v31 = vld [vmem:[%s11635_s5 + $0x58] sm:$0xff]  ;;  %v2939_v32 = vld [vmem:[%s11635_s5 + $0x70] sm:$0xff] }
  0x4d   : > { %8837 = vmatprep.mubr.msk.f32.mxu0 %vm9903_vm0, %v9904_v11  ;;  %8848 = vmatprep.mubr.msk.f32.mxu1 %vm9903_vm0, %v9904_v11 }
  0x4f   : > { %9532 = vmatpush3.bf16.msra.mxu0 %v9531_v36  ;;  %9538 = vmatpush3.bf16.msra.mxu1 %v9537_v37  ;;  %v9597_v36 = vpack.c.bf16 %v1668_v34, %v1667_v33  ;;  %v1669_v37 = vld [vmem:[%s11633_s3 + $0x140] sm:$0xff]  ;;  %v2940_v33 = vld [vmem:[%s11635_s5 + $0x78] sm:$0xff] }
  0x50   : > { %9539 = vmatprep.subr.bf16.mxu0 %v9902_v3  ;;  %9545 = vmatprep.subr.bf16.mxu1 %v9902_v3  ;;  %v9600_v41 = vpack.c.bf16 %v1670_v38, %v1669_v37  ;;  %v2942_v37 = vld [vmem:[%s11635_s5 + $0x88] sm:$0xff]  ;;  %v2945_v38 = vld [vmem:[%s11635_s5 + $0xa0] sm:$0xff] }
  0x52   : > { %8838 = vmatmul.mubr.msk.f32.vlgmr.msra.gmra.mrb[14].mxu0 %vm505_vm1, %v10056_v18  ;;  %8849 = vmatmul.mubr.msk.f32.vlgmr.msra.gmra.mrb[14].mxu1 %vm505_vm1, %v10056_v18 }
  0x53   : > { %9541 = vmatpush3.bf16.msra.mxu0 %v9540_v42  ;;  %9547 = vmatpush3.bf16.msra.mxu1 %v9546_v43  ;;  %v9606_v42 = vpack.c.bf16 %v1674_v40, %v1673_v39  ;;  %v1671_v43 = vld [vmem:[%s11633_s3 + $0x150] sm:$0xff]  ;;  %v2946_v39 = vld [vmem:[%s11635_s5 + $0xa8] sm:$0xff] }
  0x54   : > { %9542 = vmatprep.subr.bf16.mxu0 %v9902_v3  ;;  %9548 = vmatprep.subr.bf16.mxu1 %v9902_v3  ;;  %v9603_v47 = vpack.c.bf16 %v1672_v44, %v1671_v43  ;;  %v2944_v43 = vld [vmem:[%s11635_s5 + $0x98] sm:$0xff]  ;;  %v2947_v44 = vld [vmem:[%s11635_s5 + $0xb0] sm:$0xff] }
  0x55   : > { %8859 = vmatprep.mubr.msk.f32.mxu0 %vm9903_vm0, %v9904_v11  ;;  %8870 = vmatprep.mubr.msk.f32.mxu1 %vm9903_vm0, %v9904_v11 }
  0x57   : > { %9544 = vmatpush3.bf16.msra.mxu0 %v9543_v48  ;;  %9550 = vmatpush3.bf16.msra.mxu1 %v9549_v49  ;;  %v9609_v48 = vpack.c.bf16 %v1676_v46, %v1675_v45  ;;  %v1677_v49 = vld [vmem:[%s11633_s3 + $0x180] sm:$0xff]  ;;  %v2948_v45 = vld [vmem:[%s11635_s5 + $0xb8] sm:$0xff] }
  0x58   : > { %9551 = vmatprep.subr.bf16.mxu0 %v9902_v3  ;;  %9557 = vmatprep.subr.bf16.mxu1 %v9902_v3  ;;  %v9612_v53 = vpack.c.bf16 %v1678_v50, %v1677_v49  ;;  %v2950_v49 = vld [vmem:[%s11635_s5 + $0xc8] sm:$0xff]  ;;  %v2953_v50 = vld [vmem:[%s11635_s5 + $0xe0] sm:$0xff] }
  0x5a   : > { %8860 = vmatmul.mubr.msk.f32.vlgmr.msra.gmra.mrb[16].mxu0 %vm505_vm1, %v10056_v18  ;;  %8871 = vmatmul.mubr.msk.f32.vlgmr.msra.gmra.mrb[16].mxu1 %vm505_vm1, %v10056_v18 }
  0x5b   : > { %9553 = vmatpush3.bf16.msra.mxu0 %v9552_v54  ;;  %9559 = vmatpush3.bf16.msra.mxu1 %v9558_v55  ;;  %v9618_v54 = vpack.c.bf16 %v1682_v52, %v1681_v51  ;;  %v1679_v55 = vld [vmem:[%s11633_s3 + $0x190] sm:$0xff]  ;;  %v2954_v51 = vld [vmem:[%s11635_s5 + $0xe8] sm:$0xff] }
  0x5c   : > { %9554 = vmatprep.subr.bf16.mxu0 %v9902_v3  ;;  %9560 = vmatprep.subr.bf16.mxu1 %v9902_v3  ;;  %v9615_v59 = vpack.c.bf16 %v1680_v56, %v1679_v55  ;;  %v2952_v55 = vld [vmem:[%s11635_s5 + $0xd8] sm:$0xff]  ;;  %v2955_v56 = vld [vmem:[%s11635_s5 + $0xf0] sm:$0xff] }
  0x5d   : > { %8881 = vmatprep.mubr.msk.f32.mxu0 %vm9903_vm0, %v9904_v11  ;;  %8892 = vmatprep.mubr.msk.f32.mxu1 %vm9903_vm0, %v9904_v11 }
  0x5f   : > { %9556 = vmatpush3.bf16.msra.mxu0 %v9555_v60  ;;  %9562 = vmatpush3.bf16.msra.mxu1 %v9561_v61  ;;  %v9621_v60 = vpack.c.bf16 %v1684_v58, %v1683_v57  ;;  %v1685_v61 = vld [vmem:[%s11633_s3 + $0x1c0] sm:$0xff]  ;;  %v2956_v57 = vld [vmem:[%s11635_s5 + $0xf8] sm:$0xff] }
  0x60   : > { %9563 = vmatprep.subr.bf16.mxu0 %v9902_v3  ;;  %9569 = vmatprep.subr.bf16.mxu1 %v9902_v3  ;;  %v9624_v1 = vpack.c.bf16 %v1686_v62, %v1685_v61  ;;  %v2958_v61 = vld [vmem:[%s11635_s5 + $0x108] sm:$0xff]  ;;  %v2961_v62 = vld [vmem:[%s11635_s5 + $0x120] sm:$0xff] }
  0x62   : > { %8882 = vmatmul.mubr.msk.f32.vlgmr.msra.gmra.mrb[18].mxu0 %vm505_vm1, %v10056_v18  ;;  %8893 = vmatmul.mubr.msk.f32.vlgmr.msra.gmra.mrb[18].mxu1 %vm505_vm1, %v10056_v18 }
  0x63   : > { %9565 = vmatpush3.bf16.msra.mxu0 %v9564_v2  ;;  %9571 = vmatpush3.bf16.msra.mxu1 %v9570_v4  ;;  %v9630_v2 = vpack.c.bf16 %v1690_v0, %v1689_v63  ;;  %v1687_v4 = vld [vmem:[%s11633_s3 + $0x1d0] sm:$0xff]  ;;  %v2962_v63 = vld [vmem:[%s11635_s5 + $0x128] sm:$0xff] }
  0x64   : > { %9566 = vmatprep.subr.bf16.mxu0 %v9902_v3  ;;  %9572 = vmatprep.subr.bf16.mxu1 %v9902_v3  ;;  %v9627_v8 = vpack.c.bf16 %v1688_v5, %v1687_v4  ;;  %v2960_v4 = vld [vmem:[%s11635_s5 + $0x118] sm:$0xff]  ;;  %v2963_v5 = vld [vmem:[%s11635_s5 + $0x130] sm:$0xff] }
  0x65   : > { %8903 = vmatprep.mubr.msk.f32.mxu0 %vm9903_vm0, %v9904_v11  ;;  %8914 = vmatprep.mubr.msk.f32.mxu1 %vm9903_vm0, %v9904_v11 }
  0x67   : > { %9568 = vmatpush3.bf16.msra.mxu0 %v9567_v9  ;;  %9574 = vmatpush3.bf16.msra.mxu1 %v9573_v10  ;;  %v9633_v9 = vpack.c.bf16 %v1692_v7, %v1691_v6  ;;  %v2925_v10 = vld [vmem:[%s11635_s5] sm:$0xff]  ;;  %v2964_v6 = vld [vmem:[%s11635_s5 + $0x138] sm:$0xff] }
  0x68   : > { %9575 = vmatprep.subr.bf16.mxu0 %v9902_v3  ;;  %9581 = vmatprep.subr.bf16.mxu1 %v9902_v3  ;;  %v9636_v15 = vpack.c.bf16 %v2926_v12, %v2925_v10  ;;  %v2966_v10 = vld [vmem:[%s11635_s5 + $0x148] sm:$0xff]  ;;  %v2969_v12 = vld [vmem:[%s11635_s5 + $0x160] sm:$0xff] }
  0x6a   : > { %8904 = vmatmul.mubr.msk.f32.vlgmr.msra.gmra.mrb[20].mxu0 %vm505_vm1, %v10056_v18  ;;  %8915 = vmatmul.mubr.msk.f32.vlgmr.msra.gmra.mrb[20].mxu1 %vm505_vm1, %v10056_v18 }
  0x6b   : > { %9577 = vmatpush3.bf16.msra.mxu0 %v9576_v16  ;;  %9583 = vmatpush3.bf16.msra.mxu1 %v9582_v17  ;;  %v9642_v16 = vpack.c.bf16 %v2930_v14, %v2929_v13  ;;  %v2927_v17 = vld [vmem:[%s11635_s5 + $0x10] sm:$0xff]  ;;  %v2970_v13 = vld [vmem:[%s11635_s5 + $0x168] sm:$0xff] }
  0x6c   : > { %9578 = vmatprep.subr.bf16.mxu0 %v9902_v3  ;;  %9584 = vmatprep.subr.bf16.mxu1 %v9902_v3  ;;  %v9639_v22 = vpack.c.bf16 %v2928_v19, %v2927_v17  ;;  %v2968_v17 = vld [vmem:[%s11635_s5 + $0x158] sm:$0xff]  ;;  %v2971_v19 = vld [vmem:[%s11635_s5 + $0x170] sm:$0xff] }
  0x6d   : > { %8925 = vmatprep.mubr.msk.f32.mxu0 %vm9903_vm0, %v9904_v11  ;;  %8936 = vmatprep.mubr.msk.f32.mxu1 %vm9903_vm0, %v9904_v11 }
  0x6f   : > { %9580 = vmatpush3.bf16.msra.mxu0 %v9579_v23  ;;  %9586 = vmatpush3.bf16.msra.mxu1 %v9585_v24  ;;  %v9645_v23 = vpack.c.bf16 %v2932_v21, %v2931_v20  ;;  %v2933_v24 = vld [vmem:[%s11635_s5 + $0x40] sm:$0xff]  ;;  %v2972_v20 = vld [vmem:[%s11635_s5 + $0x178] sm:$0xff] }
  0x70   : > { %9587 = vmatprep.subr.bf16.mxu0 %v9902_v3  ;;  %9593 = vmatprep.subr.bf16.mxu1 %v9902_v3  ;;  %v9648_v28 = vpack.c.bf16 %v2934_v25, %v2933_v24  ;;  %v2974_v24 = vld [vmem:[%s11635_s5 + $0x188] sm:$0xff] }
  0x71   : > { %v2978_v25 = vld [vmem:[%s11635_s5 + $0x1a8] sm:$0xff] }
  0x72   : > { %8926 = vmatmul.mubr.msk.f32.vlgmr.msra.gmra.mrb[22].mxu0 %vm505_vm1, %v10056_v18  ;;  %8937 = vmatmul.mubr.msk.f32.vlgmr.msra.gmra.mrb[22].mxu1 %vm505_vm1, %v10056_v18 }
  0x73   : > { %9589 = vmatpush3.bf16.msra.mxu0 %v9588_v29  ;;  %9595 = vmatpush3.bf16.msra.mxu1 %v9594_v30  ;;  %v9654_v29 = vpack.c.bf16 %v2938_v27, %v2937_v26  ;;  %v2935_v30 = vld [vmem:[%s11635_s5 + $0x50] sm:$0xff] }
  0x74   : > { %9590 = vmatprep.subr.bf16.mxu0 %v9902_v3  ;;  %9596 = vmatprep.subr.bf16.mxu1 %v9902_v3  ;;  %v9651_v34 = vpack.c.bf16 %v2936_v31, %v2935_v30  ;;  %v2979_v30 = vld [vmem:[%s11635_s5 + $0x1b0] sm:$0xff]  ;;  %v2980_v31 = vld [vmem:[%s11635_s5 + $0x1b8] sm:$0xff] }
  0x75   : > { %8947 = vmatprep.mubr.msk.f32.mxu0 %vm9903_vm0, %v9904_v11  ;;  %8958 = vmatprep.mubr.msk.f32.mxu1 %vm9903_vm0, %v9904_v11 }
  0x77   : > { %9592 = vmatpush3.bf16.msra.mxu0 %v9591_v35  ;;  %9598 = vmatpush3.bf16.msra.mxu1 %v9597_v36  ;;  %v9657_v35 = vpack.c.bf16 %v2940_v33, %v2939_v32  ;;  %v2941_v36 = vld [vmem:[%s11635_s5 + $0x80] sm:$0xff] }
  0x78   : > { %9599 = vmatprep.subr.bf16.mxu0 %v9902_v3  ;;  %9605 = vmatprep.subr.bf16.mxu1 %v9902_v3  ;;  %v9660_v40 = vpack.c.bf16 %v2942_v37, %v2941_v36  ;;  %v9837_v32 = vld [vmem:[%s10053_s26] sm:$0xff]  ;;  %v2982_v36 = vld [vmem:[%s11635_s5 + $0x1c8] sm:$0xff]  ;;  %s8336_s26 = sshll.u32 %s9977_s13, 7  ;;  %s9905_s13 = smov [#allocation2]  }
  0x79   : > { %v2985_v37 = vld [vmem:[%s11635_s5 + $0x1e0] sm:$0xff]  ;;  %s11587_s25 = scalar_lea.hbm %s11639_s9, %s8336_s26  ;;  %s9842_s14 = sshll.u32 %s9905_s13, 4  ;;  %s9843_s14 = int_to_ptr.vmem [resolvable:$false] %s9842_s14 }
  0x7a   : > { %8948 = vmatmul.mubr.msk.f32.vlgmr.msra.gmra.mrb[24].mxu0 %vm505_vm1, %v10056_v18  ;;  %8959 = vmatmul.mubr.msk.f32.vlgmr.msra.gmra.mrb[24].mxu1 %vm505_vm1, %v10056_v18  ;;  %s9844_s16 = scalar_lea.vmem %s9843_s14, 256  ;;  %p9845_p0 = scmp.lt.s32.totalorder %s11589_s22, %s9843_s14 }
  0x7b   : > { %9601 = vmatpush3.bf16.msra.mxu0 %v9600_v41  ;;  %9607 = vmatpush3.bf16.msra.mxu1 %v9606_v42  ;;  %v9666_v41 = vpack.c.bf16 %v2946_v39, %v2945_v38  ;;  %v2943_v42 = vld [vmem:[%s11635_s5 + $0x90] sm:$0xff]  ;;  %v2986_v38 = vld [vmem:[%s11635_s5 + $0x1e8] sm:$0xff]  ;;  %p9846_p1 = scmp.lt.s32.totalorder %s9844_s16, %s9838_s28 }
  0x7c   : > { %9602 = vmatprep.subr.bf16.mxu0 %v9902_v3  ;;  %9608 = vmatprep.subr.bf16.mxu1 %v9902_v3  ;;  %v9663_v46 = vpack.c.bf16 %v2944_v43, %v2943_v42  ;;  %v2984_v42 = vld [vmem:[%s11635_s5 + $0x1d8] sm:$0xff]  ;;  %v2987_v43 = vld [vmem:[%s11635_s5 + $0x1f0] sm:$0xff] }
  0x7d   : > { %8969 = vmatprep.mubr.msk.f32.mxu0 %vm9903_vm0, %v9904_v11  ;;  %8980 = vmatprep.mubr.msk.f32.mxu1 %vm9903_vm0, %v9904_v11  ;;  %p9847_p2 = por %p9846_p1, %p9845_p0 }
  0x7f   : > { %9604 = vmatpush3.bf16.msra.mxu0 %v9603_v47  ;;  %9610 = vmatpush3.bf16.msra.mxu1 %v9609_v48  ;;  %v9669_v47 = vpack.c.bf16 %v2948_v45, %v2947_v44  ;;  %v2949_v48 = vld [vmem:[%s11635_s5 + $0xc0] sm:$0xff]  ;;  %v2988_v44 = vld [vmem:[%s11635_s5 + $0x1f8] sm:$0xff]  ;;  %p9848_p3 = pnand %p9847_p2, %p9841_p13 }
  0x80   : > { %9611 = vmatprep.subr.bf16.mxu0 %v9902_v3  ;;  %9617 = vmatprep.subr.bf16.mxu1 %v9902_v3  ;;  %v9672_v52 = vpack.c.bf16 %v2950_v49, %v2949_v48 }
  0x82   : > { %8970 = vmatmul.mubr.msk.f32.vlgmr.msra.gmra.mrb[26].mxu0 %vm505_vm1, %v10056_v18  ;;  %8981 = vmatmul.mubr.msk.f32.vlgmr.msra.gmra.mrb[26].mxu1 %vm505_vm1, %v10056_v18 }
  0x83   : > { %9613 = vmatpush3.bf16.msra.mxu0 %v9612_v53  ;;  %9619 = vmatpush3.bf16.msra.mxu1 %v9618_v54  ;;  %v9678_v53 = vpack.c.bf16 %v2954_v51, %v2953_v50  ;;  %v2951_v54 = vld [vmem:[%s11635_s5 + $0xd0] sm:$0xff] }
  0x84   : > { %9614 = vmatprep.subr.bf16.mxu0 %v9902_v3  ;;  %9620 = vmatprep.subr.bf16.mxu1 %v9902_v3  ;;  %v9675_v58 = vpack.c.bf16 %v2952_v55, %v2951_v54 }
  0x85   : > { %8991 = vmatprep.mubr.msk.f32.mxu0 %vm9903_vm0, %v9904_v11  ;;  %9002 = vmatprep.mubr.msk.f32.mxu1 %vm9903_vm0, %v9904_v11 }
  0x87   : > { %9616 = vmatpush3.bf16.msra.mxu0 %v9615_v59  ;;  %9622 = vmatpush3.bf16.msra.mxu1 %v9621_v60  ;;  %v9681_v59 = vpack.c.bf16 %v2956_v57, %v2955_v56  ;;  %v2957_v60 = vld [vmem:[%s11635_s5 + $0x100] sm:$0xff] }
  0x88   : > { %9623 = vmatprep.subr.bf16.mxu0 %v9902_v3  ;;  %9629 = vmatprep.subr.bf16.mxu1 %v9902_v3  ;;  %v9684_v0 = vpack.c.bf16 %v2958_v61, %v2957_v60 }
  0x8a   : > { %8992 = vmatmul.mubr.msk.f32.vlgmr.msra.gmra.mrb[28].mxu0 %vm505_vm1, %v10056_v18  ;;  %9003 = vmatmul.mubr.msk.f32.vlgmr.msra.gmra.mrb[28].mxu1 %vm505_vm1, %v10056_v18 }
  0x8b   : > { %9625 = vmatpush3.bf16.msra.mxu0 %v9624_v1  ;;  %9631 = vmatpush3.bf16.msra.mxu1 %v9630_v2  ;;  %v9690_v1 = vpack.c.bf16 %v2962_v63, %v2961_v62  ;;  %v2959_v2 = vld [vmem:[%s11635_s5 + $0x110] sm:$0xff] }
  0x8c   : > { %9626 = vmatprep.subr.bf16.mxu0 %v9902_v3  ;;  %9632 = vmatprep.subr.bf16.mxu1 %v9902_v3  ;;  %v9687_v7 = vpack.c.bf16 %v2960_v4, %v2959_v2 }
  0x8d   : > { %9013 = vmatprep.mubr.msk.f32.mxu0 %vm9903_vm0, %v9904_v11  ;;  %9024 = vmatprep.mubr.msk.f32.mxu1 %vm9903_vm0, %v9904_v11 }
  0x8f   : > { %9628 = vmatpush3.bf16.msra.mxu0 %v9627_v8  ;;  %9634 = vmatpush3.bf16.msra.mxu1 %v9633_v9  ;;  %v9693_v8 = vpack.c.bf16 %v2964_v6, %v2963_v5  ;;  %v2965_v9 = vld [vmem:[%s11635_s5 + $0x140] sm:$0xff] }
  0x90   : > { %9635 = vmatprep.subr.bf16.mxu0 %v9902_v3  ;;  %9641 = vmatprep.subr.bf16.mxu1 %v9902_v3  ;;  %v9696_v14 = vpack.c.bf16 %v2966_v10, %v2965_v9 }
  0x92   : > { %9014 = vmatmul.mubr.msk.f32.vlgmr.msra.gmra.mrb[30].mxu0 %vm505_vm1, %v10056_v18  ;;  %9025 = vmatmul.mubr.msk.f32.vlgmr.msra.gmra.mrb[30].mxu1 %vm505_vm1, %v10056_v18 }
  0x93   : > { %9637 = vmatpush3.bf16.msra.mxu0 %v9636_v15  ;;  %9643 = vmatpush3.bf16.msra.mxu1 %v9642_v16  ;;  %v9702_v15 = vpack.c.bf16 %v2970_v13, %v2969_v12  ;;  %v2967_v16 = vld [vmem:[%s11635_s5 + $0x150] sm:$0xff] }
  0x94   : > { %9638 = vmatprep.subr.bf16.mxu0 %v9902_v3  ;;  %9644 = vmatprep.subr.bf16.mxu1 %v9902_v3  ;;  %v9699_v21 = vpack.c.bf16 %v2968_v17, %v2967_v16  ;;  %v8190_v16 = vld [vmem:[%s11634_s4] ss:$0 sm:$0xff]  ;;  %v8191_v17 = vld [vmem:[%s11634_s4 + $0x1] ss:$0 sm:$0xff] }
  0x95   : > { %9035 = vmatprep.mubr.msk.f32.mxu0 %vm9903_vm0, %v9904_v11  ;;  %9046 = vmatprep.mubr.msk.f32.mxu1 %vm9903_vm0, %v9904_v11 }
  0x97   : > { %9640 = vmatpush3.bf16.msra.mxu0 %v9639_v22  ;;  %9646 = vmatpush3.bf16.msra.mxu1 %v9645_v23  ;;  %v9705_v22 = vpack.c.bf16 %v2972_v20, %v2971_v19  ;;  %v2973_v23 = vld [vmem:[%s11635_s5 + $0x180] sm:$0xff] }
  0x98   : > { %9647 = vmatprep.subr.bf16.mxu0 %v9902_v3  ;;  %9653 = vmatprep.subr.bf16.mxu1 %v9902_v3  ;;  %v9708_v26 = vpack.c.bf16 %v2974_v24, %v2973_v23  ;;  %v8158_v20 = vld [vmem:[%s11632_s2] ss:$0 sm:$0xff]  ;;  %v8159_v24 = vld [vmem:[%s11632_s2 + $0x1] ss:$0 sm:$0xff] }
  0x9a   : > { %9036 = vmatmul.mubr.msk.f32.vlgmr.msra.gmra.mrb[32].mxu0 %vm505_vm1, %v10056_v18  ;;  %9047 = vmatmul.mubr.msk.f32.vlgmr.msra.gmra.mrb[32].mxu1 %vm505_vm1, %v10056_v18 }
  0x9b   : > { %9649 = vmatpush3.bf16.msra.mxu0 %v9648_v28  ;;  %9655 = vmatpush3.bf16.msra.mxu1 %v9654_v29  ;;  %v2975_v28 = vld [vmem:[%s11635_s5 + $0x190] sm:$0xff]  ;;  %v2976_v29 = vld [vmem:[%s11635_s5 + $0x198] sm:$0xff] }
  0x9c   : > { %9650 = vmatprep.subr.bf16.mxu0 %v9902_v3  ;;  %9656 = vmatprep.subr.bf16.mxu1 %v9902_v3  ;;  %v9711_v33 = vpack.c.bf16 %v2976_v29, %v2975_v28  ;;  %v8192_v28 = vld [vmem:[%s11634_s4 + $0x2] ss:$0 sm:$0xff]  ;;  %v8193_v29 = vld [vmem:[%s11634_s4 + $0x3] ss:$0 sm:$0xff] }
  0x9d   : > { %9057 = vmatprep.mubr.msk.f32.mxu0 %vm9903_vm0, %v9904_v11  ;;  %9068 = vmatprep.mubr.msk.f32.mxu1 %vm9903_vm0, %v9904_v11 }
  0x9f   : > { %9652 = vmatpush3.bf16.msra.mxu0 %v9651_v34  ;;  %9658 = vmatpush3.bf16.msra.mxu1 %v9657_v35  ;;  %v9717_v34 = vpack.c.bf16 %v2980_v31, %v2979_v30  ;;  %v2981_v35 = vld [vmem:[%s11635_s5 + $0x1c0] sm:$0xff] }
  0xa0   : > { %9659 = vmatprep.subr.bf16.mxu0 %v9902_v3  ;;  %9665 = vmatprep.subr.bf16.mxu1 %v9902_v3  ;;  %v9720_v39 = vpack.c.bf16 %v2982_v36, %v2981_v35  ;;  %v8160_v31 = vld [vmem:[%s11632_s2 + $0x2] ss:$0 sm:$0xff]  ;;  %v8161_v35 = vld [vmem:[%s11632_s2 + $0x3] ss:$0 sm:$0xff] }
  0xa2   : > { %9058 = vmatmul.mubr.msk.f32.vlgmr.msra.gmra.mrb[34].mxu0 %vm505_vm1, %v10056_v18  ;;  %9069 = vmatmul.mubr.msk.f32.vlgmr.msra.gmra.mrb[34].mxu1 %vm505_vm1, %v10056_v18 }
  0xa3   : > { %9661 = vmatpush3.bf16.msra.mxu0 %v9660_v40  ;;  %9667 = vmatpush3.bf16.msra.mxu1 %v9666_v41  ;;  %v9726_v40 = vpack.c.bf16 %v2986_v38, %v2985_v37  ;;  %v2983_v41 = vld [vmem:[%s11635_s5 + $0x1d0] sm:$0xff] }
  0xa4   : > { %9662 = vmatprep.subr.bf16.mxu0 %v9902_v3  ;;  %9668 = vmatprep.subr.bf16.mxu1 %v9902_v3  ;;  %v9723_v45 = vpack.c.bf16 %v2984_v42, %v2983_v41  ;;  %v8195_v41 = vld [vmem:[%s11634_s4 + $0x5] ss:$0 sm:$0xff] }
  0xa5   : > { %9079 = vmatprep.mubr.msk.f32.mxu0 %vm9903_vm0, %v9904_v11  ;;  %9090 = vmatprep.mubr.msk.f32.mxu1 %vm9903_vm0, %v9904_v11 }
  0xa7   : > { %9664 = vmatpush3.bf16.msra.mxu0 %v9663_v46  ;;  %9670 = vmatpush3.bf16.msra.mxu1 %v9669_v47  ;;  %v9729_v46 = vpack.c.bf16 %v2988_v44, %v2987_v43  ;;  %v8162_v43 = vld [vmem:[%s11632_s2 + $0x4] ss:$0 sm:$0xff] }
  0xa8   : > { %9671 = vmatprep.subr.bf16.mxu0 %v9902_v3  ;;  %9677 = vmatprep.subr.bf16.mxu1 %v9902_v3 }
  0xaa   : > { %9080 = vmatmul.mubr.msk.f32.vlgmr.msra.gmra.mrb[36].mxu0 %vm505_vm1, %v10056_v18  ;;  %9091 = vmatmul.mubr.msk.f32.vlgmr.msra.gmra.mrb[36].mxu1 %vm505_vm1, %v10056_v18 }
  0xab   : > { %9673 = vmatpush3.bf16.msra.mxu0 %v9672_v52  ;;  %9679 = vmatpush3.bf16.msra.mxu1 %v9678_v53 }
  0xac   : > { %9674 = vmatprep.subr.bf16.mxu0 %v9902_v3  ;;  %9680 = vmatprep.subr.bf16.mxu1 %v9902_v3 }
  0xad   : > { %9101 = vmatprep.mubr.msk.f32.mxu0 %vm9903_vm0, %v9904_v11  ;;  %9112 = vmatprep.mubr.msk.f32.mxu1 %vm9903_vm0, %v9904_v11 }
  0xaf   : > { %9676 = vmatpush3.bf16.msra.mxu0 %v9675_v58  ;;  %9682 = vmatpush3.bf16.msra.mxu1 %v9681_v59 }
  0xb0   : > { %9683 = vmatprep.subr.bf16.mxu0 %v9902_v3  ;;  %9689 = vmatprep.subr.bf16.mxu1 %v9902_v3 }
  0xb2   : > { %9102 = vmatmul.mubr.msk.f32.vlgmr.msra.gmra.mrb[38].mxu0 %vm505_vm1, %v10056_v18  ;;  %9113 = vmatmul.mubr.msk.f32.vlgmr.msra.gmra.mrb[38].mxu1 %vm505_vm1, %v10056_v18 }
  0xb3   : > { %9685 = vmatpush3.bf16.msra.mxu0 %v9684_v0  ;;  %9691 = vmatpush3.bf16.msra.mxu1 %v9690_v1 }
  0xb4   : > { %9686 = vmatprep.subr.bf16.mxu0 %v9902_v3  ;;  %9692 = vmatprep.subr.bf16.mxu1 %v9902_v3 }
  0xb5   : > { %9123 = vmatprep.mubr.msk.f32.mxu0 %vm9903_vm0, %v9904_v11  ;;  %9134 = vmatprep.mubr.msk.f32.mxu1 %vm9903_vm0, %v9904_v11 }
  0xb7   : > { %9688 = vmatpush3.bf16.msra.mxu0 %v9687_v7  ;;  %9694 = vmatpush3.bf16.msra.mxu1 %v9693_v8 }
  0xb8   : > { %9695 = vmatprep.subr.bf16.mxu0 %v9902_v3  ;;  %9701 = vmatprep.subr.bf16.mxu1 %v9902_v3 }
  0xba   : > { %9124 = vmatmul.mubr.msk.f32.vlgmr.msra.gmra.mrb[40].mxu0 %vm505_vm1, %v10056_v18  ;;  %9135 = vmatmul.mubr.msk.f32.vlgmr.msra.gmra.mrb[40].mxu1 %vm505_vm1, %v10056_v18  ;;  %v2977_v18 = vld [vmem:[%s11635_s5 + $0x1a0] sm:$0xff] }
  0xbb   : > { %9697 = vmatpush3.bf16.msra.mxu0 %v9696_v14  ;;  %9703 = vmatpush3.bf16.msra.mxu1 %v9702_v15  ;;  %v9714_v27 = vpack.c.bf16 %v2978_v25, %v2977_v18 }
  0xbc   : > { %9698 = vmatprep.subr.bf16.mxu0 %v9902_v3  ;;  %9704 = vmatprep.subr.bf16.mxu1 %v9902_v3 }
  0xbd   : > { %9145 = vmatprep.mubr.msk.f32.mxu0 %vm9903_vm0, %v9904_v11  ;;  %9156 = vmatprep.mubr.msk.f32.mxu1 %vm9903_vm0, %v9904_v11 }
  0xbf   : > { %9700 = vmatpush3.bf16.msra.mxu0 %v9699_v21  ;;  %9706 = vmatpush3.bf16.msra.mxu1 %v9705_v22 }
  0xc0   : > { %9707 = vmatprep.subr.bf16.mxu0 %v9902_v3  ;;  %9713 = vmatprep.subr.bf16.mxu1 %v9902_v3 }
  0xc2   : > { %9146 = vmatmul.mubr.msk.f32.vlgmr.msra.gmra.mrb[42].mxu0 %vm505_vm1, %v9837_v32  ;;  %9157 = vmatmul.mubr.msk.f32.vlgmr.msra.gmra.mrb[42].mxu1 %vm505_vm1, %v9837_v32 }
  0xc3   : > { %9709 = vmatpush3.bf16.msra.mxu0 %v9708_v26  ;;  %9715 = vmatpush3.bf16.msra.mxu1 %v9714_v27 }
  0xc4   : > { %9710 = vmatprep.subr.bf16.mxu0 %v9902_v3  ;;  %9716 = vmatprep.subr.bf16.mxu1 %v9902_v3 }
  0xc5   : > { %9167 = vmatprep.mubr.msk.f32.mxu0 %vm9903_vm0, %v9904_v11  ;;  %9178 = vmatprep.mubr.msk.f32.mxu1 %vm9903_vm0, %v9904_v11 }
  0xc7   : > { %9712 = vmatpush3.bf16.msra.mxu0 %v9711_v33  ;;  %9718 = vmatpush3.bf16.msra.mxu1 %v9717_v34 }
  0xc8   : > { %9719 = vmatprep.subr.bf16.mxu0 %v9902_v3  ;;  %9725 = vmatprep.subr.bf16.mxu1 %v9902_v3 }
  0xca   : > { %9168 = vmatmul.mubr.msk.f32.vlgmr.msra.gmra.mrb[44].mxu0 %vm505_vm1, %v9837_v32  ;;  %9179 = vmatmul.mubr.msk.f32.vlgmr.msra.gmra.mrb[44].mxu1 %vm505_vm1, %v9837_v32 }
  0xcb   : > { %9721 = vmatpush3.bf16.msra.mxu0 %v9720_v39  ;;  %9727 = vmatpush3.bf16.msra.mxu1 %v9726_v40  ;;  %v8194_v40 = vld [vmem:[%s11634_s4 + $0x4] ss:$0 sm:$0xff] }
  0xcc   : > { %9722 = vmatprep.subr.bf16.mxu0 %v9902_v3  ;;  %9728 = vmatprep.subr.bf16.mxu1 %v9902_v3 }
  0xcd   : > { %9189 = vmatprep.mubr.msk.f32.mxu0 %vm9903_vm0, %v9904_v11  ;;  %9200 = vmatprep.mubr.msk.f32.mxu1 %vm9903_vm0, %v9904_v11 }
  0xcf   : > { %9724 = vmatpush3.bf16.msra.mxu0 %v9723_v45  ;;  %9730 = vmatpush3.bf16.msra.mxu1 %v9729_v46 }
  0xd0   : > { %9203 = vmatprep.subr.mxu0 %v9904_v11  ;;  %9208 = vmatprep.subr.mxu1 %v9904_v11 }
  0xd2   : > { %9190 = vmatmul.mubr.msk.f32.vlgmr.msra.gmra.mrb[46].mxu0 %vm505_vm1, %v9837_v32  ;;  %9201 = vmatmul.mubr.msk.f32.vlgmr.msra.gmra.mrb[46].mxu1 %vm505_vm1, %v9837_v32 }
  0xd3   : > { %9205 = vmatprep.mubr.msk.f32.mxu0 %vm9903_vm0, %v9904_v11  ;;  %9210 = vmatprep.mubr.msk.f32.mxu1 %vm9903_vm0, %v9904_v11 }
  0xed   : > { %v575_v3 = vpop.f32.mrb[0].mxu0  ;;  %v645_v48 = vpop.f32.mrb[0].mxu1 }
  0xee   : > { %v8685_v47 = vpop.f32.mrb[1].mxu0  ;;  %v8696_v49 = vpop.f32.mrb[1].mxu1  ;;  %v576_v26 = vadd.f32 %v8158_v20, %v575_v3  ;;  %v646_v27 = vadd.f32 %v8159_v24, %v645_v48  ;;  %v8163_v3 = vld [vmem:[%s11632_s2 + $0x5] ss:$0 sm:$0xff] }
  0xf5   : > { %v715_v50 = vpop.f32.mrb[2].mxu0  ;;  %v785_v52 = vpop.f32.mrb[2].mxu1 }
  0xf6   : > { %v8707_v51 = vpop.f32.mrb[3].mxu0  ;;  %v8718_v53 = vpop.f32.mrb[3].mxu1  ;;  %v716_v38 = vadd.f32 %v8160_v31, %v715_v50  ;;  %v786_v39 = vadd.f32 %v8161_v35, %v785_v52  ;;  %v8197_v52 = vld [vmem:[%s11634_s4 + $0x7] ss:$0 sm:$0xff]  ;;  %v8202_v31 = vld [vmem:[%s11634_s4 + $0xc] ss:$0 sm:$0xff] }
  0xf7   : > { %v8196_v51 = vld [vmem:[%s11634_s4 + $0x6] ss:$0 sm:$0xff] }
  0xfd   : > { %v10879_v54 = vpop.f32.mrb[4].mxu0  ;;  %v10881_v56 = vpop.f32.mrb[4].mxu1 }
  0xfe   : > { %v8729_v55 = vpop.f32.mrb[5].mxu0  ;;  %v8740_v57 = vpop.f32.mrb[5].mxu1  ;;  %v856_v49 = vadd.f32 %v8162_v43, %v10879_v54  ;;  %v926_v50 = vadd.f32 %v8163_v3, %v10881_v56  ;;  %v8164_v54 = vld [vmem:[%s11632_s2 + $0x6] ss:$0 sm:$0xff] }
 0x105   : > { %v10883_v58 = vpop.f32.mrb[6].mxu0  ;;  %v10885_v60 = vpop.f32.mrb[6].mxu1 }
 0x106   : > { %v8751_v59 = vpop.f32.mrb[7].mxu0  ;;  %v8762_v61 = vpop.f32.mrb[7].mxu1 }
 0x107   : > { %v8165_v59 = vld [vmem:[%s11632_s2 + $0x7] ss:$0 sm:$0xff] }
 0x10d   : > { %v10887_v62 = vpop.f32.mrb[8].mxu0  ;;  %v10889_v0 = vpop.f32.mrb[8].mxu1 }
 0x10e   : > { %v8773_v63 = vpop.f32.mrb[9].mxu0  ;;  %v8784_v1 = vpop.f32.mrb[9].mxu1 }
 0x10f   : > { %v996_v1 = vadd.f32 %v8164_v54, %v10883_v58  ;;  %v8199_v58 = vld [vmem:[%s11634_s4 + $0x9] ss:$0 sm:$0xff] }
 0x115   : > { %v10891_v2 = vpop.f32.mrb[10].mxu0  ;;  %v10893_v5 = vpop.f32.mrb[10].mxu1 }
 0x116   : > { %v8795_v4 = vpop.f32.mrb[11].mxu0  ;;  %v8806_v6 = vpop.f32.mrb[11].mxu1 }
 0x117   : > { %v1066_v4 = vadd.f32 %v8165_v59, %v10885_v60  ;;  %v8198_v6 = vld [vmem:[%s11634_s4 + $0x8] ss:$0 sm:$0xff] }
 0x118   : > { %v8166_v60 = vld [vmem:[%s11632_s2 + $0x8] ss:$0 sm:$0xff] }
 0x119   : > { %v1136_v20 = vadd.f32 %v8166_v60, %v10887_v62  ;;  %v8201_v62 = vld [vmem:[%s11634_s4 + $0xb] ss:$0 sm:$0xff] }
 0x11d   : > { %v10895_v7 = vpop.f32.mrb[12].mxu0  ;;  %v10897_v9 = vpop.f32.mrb[12].mxu1 }
 0x11e   : > { %v8817_v8 = vpop.f32.mrb[13].mxu0  ;;  %v8828_v10 = vpop.f32.mrb[13].mxu1 }
 0x125   : > { %v10899_v12 = vpop.f32.mrb[14].mxu0  ;;  %v10901_v14 = vpop.f32.mrb[14].mxu1 }
 0x126   : > { %v8839_v13 = vpop.f32.mrb[15].mxu0  ;;  %v8850_v15 = vpop.f32.mrb[15].mxu1 }
 0x12d   : > { %v1871_v19 = vpop.f32.mrb[16].mxu0  ;;  %v1941_v22 = vpop.f32.mrb[16].mxu1 }
 0x12e   : > { %v1872_v21 = vadd.f32 %v8190_v16, %v1871_v19  ;;  %v8861_v23 = vpop.f32.mrb[17].mxu0  ;;  %v1942_v18 = vadd.f32 %v8191_v17, %v1941_v22  ;;  %v8872_v25 = vpop.f32.mrb[17].mxu1  ;;  %v8167_v16 = vld [vmem:[%s11632_s2 + $0x9] ss:$0 sm:$0xff]  ;;  %v8200_v22 = vld [vmem:[%s11634_s4 + $0xa] ss:$0 sm:$0xff] }
 0x130   : > { %9204 = vmatpush3.xpose.msk.msra.mxu0 %vm4221_vm2, %v1872_v21  ;;  %9209 = vmatpush3.xpose.msk.msra.mxu1 %vm4221_vm2, %v1942_v18  ;;  %v1206_v21 = vadd.f32 %v8167_v16, %v10889_v0  ;;  %v8168_v0 = vld [vmem:[%s11632_s2 + $0xa] ss:$0 sm:$0xff] }
 0x131   : > { %9213 = vmatprep.subr.mxu0 %v9904_v11  ;;  %9218 = vmatprep.subr.mxu1 %v9904_v11 }
 0x133   : > { %9206 = vmatmul.mubr.msk.f32.vlgmr.msra.gmra.mrb[48].mxu0 %vm4221_vm2, %v576_v26  ;;  %9211 = vmatmul.mubr.msk.f32.vlgmr.msra.gmra.mrb[48].mxu1 %vm4221_vm2, %v646_v27  ;;  %v8169_v26 = vld [vmem:[%s11632_s2 + $0xb] ss:$0 sm:$0xff] }
 0x134   : > { %9215 = vmatprep.mubr.msk.f32.mxu0 %vm9903_vm0, %v9904_v11  ;;  %9220 = vmatprep.mubr.msk.f32.mxu1 %vm9903_vm0, %v9904_v11 }
 0x135   : > { %v2011_v30 = vpop.f32.mrb[18].mxu0  ;;  %v2081_v33 = vpop.f32.mrb[18].mxu1 }
 0x136   : > { %v2012_v32 = vadd.f32 %v8192_v28, %v2011_v30  ;;  %v8883_v34 = vpop.f32.mrb[19].mxu0  ;;  %v2082_v36 = vadd.f32 %v8193_v29, %v2081_v33  ;;  %v8894_v37 = vpop.f32.mrb[19].mxu1  ;;  %v1276_v29 = vadd.f32 %v8168_v0, %v10891_v2  ;;  %v1346_v30 = vadd.f32 %v8169_v26, %v10893_v5  ;;  %v8203_v2 = vld [vmem:[%s11634_s4 + $0xd] ss:$0 sm:$0xff]  ;;  %v8170_v5 = vld [vmem:[%s11632_s2 + $0xc] ss:$0 sm:$0xff] }
 0x138   : > { %9214 = vmatpush3.xpose.msk.msra.mxu0 %vm4221_vm2, %v2012_v32  ;;  %9219 = vmatpush3.xpose.msk.msra.mxu1 %vm4221_vm2, %v2082_v36  ;;  %v8171_v36 = vld [vmem:[%s11632_s2 + $0xd] ss:$0 sm:$0xff] }
 0x139   : > { %9223 = vmatprep.subr.mxu0 %v9904_v11  ;;  %9228 = vmatprep.subr.mxu1 %v9904_v11 }
 0x13b   : > { %9216 = vmatmul.mubr.msk.f32.vlgmr.msra.gmra.mrb[50].mxu0 %vm4221_vm2, %v716_v38  ;;  %9221 = vmatmul.mubr.msk.f32.vlgmr.msra.gmra.mrb[50].mxu1 %vm4221_vm2, %v786_v39  ;;  %v1416_v39 = vadd.f32 %v8170_v5, %v10895_v7  ;;  %v8205_v7 = vld [vmem:[%s11634_s4 + $0xf] ss:$0 sm:$0xff] }
 0x13c   : > { %9225 = vmatprep.mubr.msk.f32.mxu0 %vm9903_vm0, %v9904_v11  ;;  %9230 = vmatprep.mubr.msk.f32.mxu1 %vm9903_vm0, %v9904_v11 }
 0x13d   : > { %v2151_v42 = vpop.f32.mrb[20].mxu0  ;;  %v2221_v45 = vpop.f32.mrb[20].mxu1 }
 0x13e   : > { %v2152_v44 = vadd.f32 %v8194_v40, %v2151_v42  ;;  %v8905_v46 = vpop.f32.mrb[21].mxu0  ;;  %v2222_v47 = vadd.f32 %v8195_v41, %v2221_v45  ;;  %v8916_v48 = vpop.f32.mrb[21].mxu1  ;;  %v1486_v40 = vadd.f32 %v8171_v36, %v10897_v9  ;;  %v8204_v41 = vld [vmem:[%s11634_s4 + $0xe] ss:$0 sm:$0xff] }
 0x13f   : > { %v8172_v9 = vld [vmem:[%s11632_s2 + $0xe] ss:$0 sm:$0xff]  ;;  %v8173_v46 = vld [vmem:[%s11632_s2 + $0xf] ss:$0 sm:$0xff] }
 0x140   : > { %9224 = vmatpush3.xpose.msk.msra.mxu0 %vm4221_vm2, %v2152_v44  ;;  %9229 = vmatpush3.xpose.msk.msra.mxu1 %vm4221_vm2, %v2222_v47  ;;  %v1556_v48 = vadd.f32 %v8172_v9, %v10899_v12  ;;  %v8223_v12 = vld [vmem:[%s11636_s6 + $0x1] ss:$0 sm:$0xff] }
 0x141   : > { %9233 = vmatprep.subr.mxu0 %v9904_v11  ;;  %9238 = vmatprep.subr.mxu1 %v9904_v11 }
 0x143   : > { %9226 = vmatmul.mubr.msk.f32.vlgmr.msra.gmra.mrb[52].mxu0 %vm4221_vm2, %v856_v49  ;;  %9231 = vmatmul.mubr.msk.f32.vlgmr.msra.gmra.mrb[52].mxu1 %vm4221_vm2, %v926_v50  ;;  %v1626_v49 = vadd.f32 %v8173_v46, %v10901_v14  ;;  %v8222_v50 = vld [vmem:[%s11636_s6] ss:$0 sm:$0xff] }
 0x144   : > { %9235 = vmatprep.mubr.msk.f32.mxu0 %vm9903_vm0, %v9904_v11  ;;  %9240 = vmatprep.mubr.msk.f32.mxu1 %vm9903_vm0, %v9904_v11 }
 0x145   : > { %v2291_v53 = vpop.f32.mrb[22].mxu0  ;;  %v2361_v56 = vpop.f32.mrb[22].mxu1 }
 0x146   : > { %v2292_v55 = vadd.f32 %v8196_v51, %v2291_v53  ;;  %v8927_v57 = vpop.f32.mrb[23].mxu0  ;;  %v2362_v61 = vadd.f32 %v8197_v52, %v2361_v56  ;;  %v8938_v63 = vpop.f32.mrb[23].mxu1 }
 0x148   : > { %9234 = vmatpush3.xpose.msk.msra.mxu0 %vm4221_vm2, %v2292_v55  ;;  %9239 = vmatpush3.xpose.msk.msra.mxu1 %vm4221_vm2, %v2362_v61 }
 0x149   : > { %9243 = vmatprep.subr.mxu0 %v9904_v11  ;;  %9248 = vmatprep.subr.mxu1 %v9904_v11 }
 0x14b   : > { %9236 = vmatmul.mubr.msk.f32.vlgmr.msra.gmra.mrb[54].mxu0 %vm4221_vm2, %v996_v1  ;;  %9241 = vmatmul.mubr.msk.f32.vlgmr.msra.gmra.mrb[54].mxu1 %vm4221_vm2, %v1066_v4 }
 0x14c   : > { %9245 = vmatprep.mubr.msk.f32.mxu0 %vm9903_vm0, %v9904_v11  ;;  %9250 = vmatprep.mubr.msk.f32.mxu1 %vm9903_vm0, %v9904_v11 }
 0x14d   : > { %v2431_v8 = vpop.f32.mrb[24].mxu0  ;;  %v2501_v13 = vpop.f32.mrb[24].mxu1 }
 0x14e   : > { %v2432_v10 = vadd.f32 %v8198_v6, %v2431_v8  ;;  %v8949_v15 = vpop.f32.mrb[25].mxu0  ;;  %v2502_v17 = vadd.f32 %v8199_v58, %v2501_v13  ;;  %v8960_v19 = vpop.f32.mrb[25].mxu1 }
 0x150   : > { %9244 = vmatpush3.xpose.msk.msra.mxu0 %vm4221_vm2, %v2432_v10  ;;  %9249 = vmatpush3.xpose.msk.msra.mxu1 %vm4221_vm2, %v2502_v17 }
 0x151   : > { %9253 = vmatprep.subr.mxu0 %v9904_v11  ;;  %9258 = vmatprep.subr.mxu1 %v9904_v11 }
 0x153   : > { %9246 = vmatmul.mubr.msk.f32.vlgmr.msra.gmra.mrb[56].mxu0 %vm4221_vm2, %v1136_v20  ;;  %9251 = vmatmul.mubr.msk.f32.vlgmr.msra.gmra.mrb[56].mxu1 %vm4221_vm2, %v1206_v21 }
 0x154   : > { %9255 = vmatprep.mubr.msk.f32.mxu0 %vm9903_vm0, %v9904_v11  ;;  %9260 = vmatprep.mubr.msk.f32.mxu1 %vm9903_vm0, %v9904_v11 }
 0x155   : > { %v2571_v23 = vpop.f32.mrb[26].mxu0  ;;  %v2641_v18 = vpop.f32.mrb[26].mxu1 }
 0x156   : > { %v2572_v24 = vadd.f32 %v8200_v22, %v2571_v23  ;;  %v8971_v25 = vpop.f32.mrb[27].mxu0  ;;  %v2642_v27 = vadd.f32 %v8201_v62, %v2641_v18  ;;  %v8982_v28 = vpop.f32.mrb[27].mxu1 }
 0x157   : > { %v5438_v28 = vlaneseq }
 0x158   : > { %9254 = vmatpush3.xpose.msk.msra.mxu0 %vm4221_vm2, %v2572_v24  ;;  %9259 = vmatpush3.xpose.msk.msra.mxu1 %vm4221_vm2, %v2642_v27 }
 0x159   : > { %9263 = vmatprep.subr.mxu0 %v9904_v11  ;;  %9268 = vmatprep.subr.mxu1 %v9904_v11 }
 0x15b   : > { %9256 = vmatmul.mubr.msk.f32.vlgmr.msra.gmra.mrb[58].mxu0 %vm4221_vm2, %v1276_v29  ;;  %9261 = vmatmul.mubr.msk.f32.vlgmr.msra.gmra.mrb[58].mxu1 %vm4221_vm2, %v1346_v30  ;;  %v5439_v29 = vshrl.u32 %v5438_v28, 7  ;;  %v5441_v30 = vand.u32 127, %v5438_v28 }
 0x15c   : > { %9265 = vmatprep.mubr.msk.f32.mxu0 %vm9903_vm0, %v9904_v11  ;;  %9270 = vmatprep.mubr.msk.f32.mxu1 %vm9903_vm0, %v9904_v11 }
 0x15d   : > { %v2711_v32 = vpop.f32.mrb[28].mxu0  ;;  %v2781_v34 = vpop.f32.mrb[28].mxu1  ;;  %vm11127_vm3 = vcmp.ge.s32.totalorder %v5439_v29, %v5441_v30 }
 0x15e   : > { %v2712_v33 = vadd.f32 %v8202_v31, %v2711_v32  ;;  %v8993_v35 = vpop.f32.mrb[29].mxu0  ;;  %v2782_v37 = vadd.f32 %v8203_v2, %v2781_v34  ;;  %v9004_v38 = vpop.f32.mrb[29].mxu1 }
 0x160   : > { %9264 = vmatpush3.xpose.msk.msra.mxu0 %vm4221_vm2, %v2712_v33  ;;  %9269 = vmatpush3.xpose.msk.msra.mxu1 %vm4221_vm2, %v2782_v37 }
 0x161   : > { %9273 = vmatprep.subr.mxu0 %v9904_v11  ;;  %9278 = vmatprep.subr.mxu1 %v9904_v11 }
 0x163   : > { %9266 = vmatmul.mubr.msk.f32.vlgmr.msra.gmra.mrb[60].mxu0 %vm4221_vm2, %v1416_v39  ;;  %9271 = vmatmul.mubr.msk.f32.vlgmr.msra.gmra.mrb[60].mxu1 %vm4221_vm2, %v1486_v40 }
 0x164   : > { %9275 = vmatprep.mubr.msk.f32.mxu0 %vm9903_vm0, %v9904_v11  ;;  %9280 = vmatprep.mubr.msk.f32.mxu1 %vm9903_vm0, %v9904_v11 }
 0x165   : > { %v2851_v42 = vpop.f32.mrb[30].mxu0  ;;  %v2921_v44 = vpop.f32.mrb[30].mxu1 }
 0x166   : > { %v2852_v43 = vadd.f32 %v8204_v41, %v2851_v42  ;;  %v9015_v45 = vpop.f32.mrb[31].mxu0  ;;  %v2922_v3 = vadd.f32 %v8205_v7, %v2921_v44  ;;  %v9026_v47 = vpop.f32.mrb[31].mxu1 }
 0x168   : > { %9274 = vmatpush3.xpose.msk.msra.mxu0 %vm4221_vm2, %v2852_v43  ;;  %9279 = vmatpush3.xpose.msk.msra.mxu1 %vm4221_vm2, %v2922_v3 }
 0x169   : > { %9283 = vmatprep.subr.mxu0 %v9904_v11  ;;  %9288 = vmatprep.subr.mxu1 %v9904_v11 }
 0x16b   : > { %9276 = vmatmul.mubr.msk.f32.vlgmr.msra.gmra.mrb[62].mxu0 %vm4221_vm2, %v1556_v48  ;;  %9281 = vmatmul.mubr.msk.f32.vlgmr.msra.gmra.mrb[62].mxu1 %vm4221_vm2, %v1626_v49 }
 0x16c   : > { %9285 = vmatprep.mubr.msk.f32.mxu0 %vm9903_vm0, %v9904_v11  ;;  %9290 = vmatprep.mubr.msk.f32.mxu1 %vm9903_vm0, %v9904_v11 }
 0x16d   : > { %v3167_v51 = vpop.f32.mrb[32].mxu0  ;;  %v3237_v53 = vpop.f32.mrb[32].mxu1 }
 0x16e   : > { %v3168_v14 = vadd.f32 %v8222_v50, %v3167_v51  ;;  %v9037_v52 = vpop.f32.mrb[33].mxu0  ;;  %v3238_v54 = vadd.f32 %v8223_v12, %v3237_v53  ;;  %v9048_v55 = vpop.f32.mrb[33].mxu1 }
 0x170   : > { %9284 = vmatpush3.msra.mxu0 %v3168_v14  ;;  %9289 = vmatpush3.msra.mxu1 %v3238_v54 }
 0x171   : > { %9293 = vmatprep.subr.mxu0 %v9904_v11  ;;  %9298 = vmatprep.subr.mxu1 %v9904_v11 }
 0x175   : > { %v11099_v56 = vpop.f32.mrb[34].mxu0  ;;  %v11101_v59 = vpop.f32.mrb[34].mxu1 }
 0x176   : > { %v9059_v57 = vpop.f32.mrb[35].mxu0  ;;  %v9070_v61 = vpop.f32.mrb[35].mxu1 }
 0x17d   : > { %v11103_v63 = vpop.f32.mrb[36].mxu0  ;;  %v11105_v4 = vpop.f32.mrb[36].mxu1 }
 0x17e   : > { %v9081_v1 = vpop.f32.mrb[37].mxu0  ;;  %v9092_v6 = vpop.f32.mrb[37].mxu1 }
 0x185   : > { %v11107_v58 = vpop.f32.mrb[38].mxu0  ;;  %v11109_v60 = vpop.f32.mrb[38].mxu1 }
 0x186   : > { %v9103_v8 = vpop.f32.mrb[39].mxu0  ;;  %v9114_v10 = vpop.f32.mrb[39].mxu1 }
 0x18d   : > { %v11111_v13 = vpop.f32.mrb[40].mxu0  ;;  %v11113_v15 = vpop.f32.mrb[40].mxu1 }
 0x18e   : > { %v9125_v16 = vpop.f32.mrb[41].mxu0  ;;  %v9136_v17 = vpop.f32.mrb[41].mxu1 }
 0x195   : > { %v11115_v19 = vpop.f32.mrb[42].mxu0  ;;  %v11117_v20 = vpop.f32.mrb[42].mxu1 }
 0x196   : > { %v9147_v21 = vpop.f32.mrb[43].mxu0  ;;  %v9158_v22 = vpop.f32.mrb[43].mxu1 }
 0x19d   : > { %v11119_v62 = vpop.f32.mrb[44].mxu0  ;;  %v11121_v23 = vpop.f32.mrb[44].mxu1 }
 0x19e   : > { %v9169_v0 = vpop.f32.mrb[45].mxu0  ;;  %v9180_v24 = vpop.f32.mrb[45].mxu1 }
 0x1a5   : > { %v11123_v18 = vpop.f32.mrb[46].mxu0  ;;  %v11125_v25 = vpop.f32.mrb[46].mxu1 }
 0x1a6   : > { %v9191_v26 = vpop.f32.mrb[47].mxu0  ;;  %v9202_v27 = vpop.f32.mrb[47].mxu1 }
 0x206   : > { %v4294_v2 = vpop.f32.mrb[48].mxu0  ;;  %v4370_v5 = vpop.f32.mrb[48].mxu1 }
 0x207   : > { %v11133_v32 = vsel %vm11127_vm3, %v4294_v2, -inf  ;;  %v9207_v33 = vpop.f32.mrb[49].mxu0  ;;  %v9212_v34 = vpop.f32.mrb[49].mxu1  ;;  %v11139_v36 = vsel %vm11127_vm3, %v4370_v5, -inf }
 0x208   : > { %v5462_v35 = vsel %vm5461_vm4, %v11133_v32, -inf  ;;  %v5465_v37 = vsel %vm5461_vm4, %v11139_v36, -inf }
 0x209   : > { %5463 = vmax.xlane.f32.xlu0 %v5462_v35 }
 0x20d   : > { %5466 = vmax.xlane.f32.xlu0 %v5465_v37 }
 0x20e   : > { %v4446_v38 = vpop.f32.mrb[50].mxu0  ;;  %v4522_v40 = vpop.f32.mrb[50].mxu1 }
 0x20f   : > { %v11145_v39 = vsel %vm11127_vm3, %v4446_v38, -inf  ;;  %v9217_v41 = vpop.f32.mrb[51].mxu0  ;;  %v9222_v7 = vpop.f32.mrb[51].mxu1  ;;  %v11151_v9 = vsel %vm11127_vm3, %v4522_v40, -inf }
 0x210   : > { %v5468_v42 = vsel %vm5461_vm4, %v11145_v39, -inf  ;;  %v5471_v43 = vsel %vm5461_vm4, %v11151_v9, -inf }
 0x211   : > { %5469 = vmax.xlane.f32.xlu1 %v5468_v42 }
 0x215   : > { %5472 = vmax.xlane.f32.xlu1 %v5471_v43 }
 0x216   : > { %v4598_v44 = vpop.f32.mrb[52].mxu0  ;;  %v4674_v46 = vpop.f32.mrb[52].mxu1 }
 0x217   : > { %v11157_v45 = vsel %vm11127_vm3, %v4598_v44, -inf  ;;  %v9227_v3 = vpop.f32.mrb[53].mxu0  ;;  %v11161_v47 = vsel %vm11127_vm3, %v4674_v46, -inf  ;;  %v9232_v48 = vpop.f32.mrb[53].mxu1 }
 0x218   : > { %v5474_v49 = vsel %vm5461_vm4, %v11157_v45, -inf  ;;  %v5477_v50 = vsel %vm5461_vm4, %v11161_v47, -inf }
 0x219   : > { %5475 = vmax.xlane.f32.xlu0 %v5474_v49  ;;  %5478 = vmax.xlane.f32.xlu1 %v5477_v50 }
 0x21e   : > { %v4750_v12 = vpop.f32.mrb[54].mxu0  ;;  %v4826_v14 = vpop.f32.mrb[54].mxu1 }
 0x21f   : > { %v11169_v51 = vsel %vm11127_vm3, %v4750_v12, -inf  ;;  %v9237_v52 = vpop.f32.mrb[55].mxu0  ;;  %v11173_v53 = vsel %vm11127_vm3, %v4826_v14, -inf  ;;  %v9242_v54 = vpop.f32.mrb[55].mxu1 }
 0x220   : > { %v5480_v55 = vsel %vm5461_vm4, %v11169_v51, -inf  ;;  %v5483_v57 = vsel %vm5461_vm4, %v11173_v53, -inf }
 0x221   : > { %5481 = vmax.xlane.f32.xlu0 %v5480_v55  ;;  %5484 = vmax.xlane.f32.xlu1 %v5483_v57 }
 0x226   : > { %v4902_v61 = vpop.f32.mrb[56].mxu0  ;;  %v4978_v6 = vpop.f32.mrb[56].mxu1 }
 0x227   : > { %v11181_v1 = vsel %vm11127_vm3, %v4902_v61, -inf  ;;  %v9247_v8 = vpop.f32.mrb[57].mxu0  ;;  %v11185_v10 = vsel %vm11127_vm3, %v4978_v6, -inf  ;;  %v9252_v16 = vpop.f32.mrb[57].mxu1 }
 0x228   : > { %v5486_v17 = vsel %vm5461_vm4, %v11181_v1, -inf  ;;  %v5489_v21 = vsel %vm5461_vm4, %v11185_v10, -inf }
 0x229   : > { %5487 = vmax.xlane.f32.xlu0 %v5486_v17  ;;  %5490 = vmax.xlane.f32.xlu1 %v5489_v21 }
 0x22e   : > { %v5054_v22 = vpop.f32.mrb[58].mxu0  ;;  %v5130_v24 = vpop.f32.mrb[58].mxu1 }
 0x22f   : > { %v11193_v0 = vsel %vm11127_vm3, %v5054_v22, -inf  ;;  %v9257_v26 = vpop.f32.mrb[59].mxu0  ;;  %v11197_v27 = vsel %vm11127_vm3, %v5130_v24, -inf  ;;  %v9262_v28 = vpop.f32.mrb[59].mxu1 }
 0x230   : > { %v5492_v29 = vsel %vm5461_vm4, %v11193_v0, -inf  ;;  %v5495_v30 = vsel %vm5461_vm4, %v11197_v27, -inf }
 0x231   : > { %5493 = vmax.xlane.f32.xlu0 %v5492_v29  ;;  %5496 = vmax.xlane.f32.xlu1 %v5495_v30 }
 0x236   : > { %v5206_v2 = vpop.f32.mrb[60].mxu0  ;;  %v5282_v33 = vpop.f32.mrb[60].mxu1 }
 0x237   : > { %v11205_v5 = vsel %vm11127_vm3, %v5206_v2, -inf  ;;  %v9267_v34 = vpop.f32.mrb[61].mxu0  ;;  %v11209_v35 = vsel %vm11127_vm3, %v5282_v33, -inf  ;;  %v9272_v37 = vpop.f32.mrb[61].mxu1 }
 0x238   : > { %v5498_v38 = vsel %vm5461_vm4, %v11205_v5, -inf  ;;  %v5501_v40 = vsel %vm5461_vm4, %v11209_v35, -inf }
 0x239   : > { %5499 = vmax.xlane.f32.xlu0 %v5498_v38  ;;  %5502 = vmax.xlane.f32.xlu1 %v5501_v40 }
 0x23e   : > { %v5358_v41 = vpop.f32.mrb[62].mxu0  ;;  %v5434_v42 = vpop.f32.mrb[62].mxu1 }
 0x23f   : > { %v11217_v7 = vsel %vm11127_vm3, %v5358_v41, -inf  ;;  %v9277_v43 = vpop.f32.mrb[63].mxu0  ;;  %v11221_v44 = vsel %vm11127_vm3, %v5434_v42, -inf  ;;  %v9282_v46 = vpop.f32.mrb[63].mxu1 }
 0x240   : > { %v5504_v3 = vsel %vm5461_vm4, %v11217_v7, -inf  ;;  %v5507_v48 = vsel %vm5461_vm4, %v11221_v44, -inf }
 0x241   : > { %5505 = vmax.xlane.f32.xlu0 %v5504_v3  ;;  %5508 = vmax.xlane.f32.xlu1 %v5507_v48 }
 0x296   : > { %v5464_v49 = vpop.xlane.xlu0 %5463 }
 0x297   : > { %v5510_v50 = vsub.f32 %v11133_v32, %v5464_v49 }
 0x299   : > { %v5526_v12 = vmul.f32 1.442695, %v5510_v50 }
 0x29a   : > { %v5467_v14 = vpop.xlane.xlu0 %5466 }
 0x29b   : > { %9773 = vpow2.f32 %v5526_v12  ;;  %v5511_v52 = vsub.f32 %v11139_v36, %v5467_v14 }
 0x29d   : > { %v5528_v31 = vmul.f32 1.442695, %v5511_v52 }
 0x29e   : > { %v5470_v54 = vpop.xlane.xlu1 %5469 }
 0x29f   : > { %9775 = vpow2.f32 %v5528_v31  ;;  %v5512_v55 = vsub.f32 %v11145_v39, %v5470_v54 }
 0x2a1   : > { %v5530_v57 = vmul.f32 1.442695, %v5512_v55 }
 0x2a2   : > { %v5473_v61 = vpop.xlane.xlu1 %5472 }
 0x2a3   : > { %9777 = vpow2.f32 %v5530_v57  ;;  %v5513_v6 = vsub.f32 %v11151_v9, %v5473_v61 }
 0x2a5   : > { %v11231_v8 = vpop.eup %9773  ;;  %v5532_v16 = vmul.f32 1.442695, %v5513_v6 }
 0x2a6   : > { %v5476_v17 = vpop.xlane.xlu0 %5475  ;;  %v5558_v32 = vsel %vm5461_vm4, %v11231_v8, 0.0  ;;  %v5479_v21 = vpop.xlane.xlu1 %5478 }
 0x2a7   : > { %9779 = vpow2.f32 %v5532_v16  ;;  %v5514_v36 = vsub.f32 %v11157_v45, %v5476_v17  ;;  %5559 = vadd.xlane.f32.xlu0 %v5558_v32  ;;  %v5515_v22 = vsub.f32 %v11161_v47, %v5479_v21 }
 0x2a9   : > { %v11237_v39 = vpop.eup %9775  ;;  %v5534_v24 = vmul.f32 1.442695, %v5514_v36  ;;  %v5536_v26 = vmul.f32 1.442695, %v5515_v22 }
 0x2aa   : > { %v5561_v9 = vsel %vm5461_vm4, %v11237_v39, 0.0 }
 0x2ab   : > { %9781 = vpow2.f32 %v5534_v24  ;;  %5562 = vadd.xlane.f32.xlu1 %v5561_v9 }
 0x2ac   : > { %9783 = vpow2.f32 %v5536_v26 }
 0x2ad   : > { %v11241_v28 = vpop.eup %9777 }
 0x2ae   : > { %v5482_v29 = vpop.xlane.xlu0 %5481  ;;  %v5564_v30 = vsel %vm5461_vm4, %v11241_v28, 0.0  ;;  %v5485_v45 = vpop.xlane.xlu1 %5484 }
 0x2af   : > { %v5516_v2 = vsub.f32 %v11169_v51, %v5482_v29  ;;  %5565 = vadd.xlane.f32.xlu0 %v5564_v30  ;;  %v5517_v47 = vsub.f32 %v11173_v53, %v5485_v45 }
 0x2b1   : > { %v11247_v33 = vpop.eup %9779  ;;  %v5538_v34 = vmul.f32 1.442695, %v5516_v2  ;;  %v5540_v37 = vmul.f32 1.442695, %v5517_v47 }
 0x2b2   : > { %v5567_v38 = vsel %vm5461_vm4, %v11247_v33, 0.0 }
 0x2b3   : > { %9785 = vpow2.f32 %v5538_v34  ;;  %5568 = vadd.xlane.f32.xlu1 %v5567_v38 }
 0x2b4   : > { %9787 = vpow2.f32 %v5540_v37 }
 0x2b5   : > { %v11251_v40 = vpop.eup %9781 }
 0x2b6   : > { %v11253_v41 = vpop.eup %9783  ;;  %v5488_v42 = vpop.xlane.xlu0 %5487  ;;  %v5570_v51 = vsel %vm5461_vm4, %v11251_v40, 0.0 }
 0x2b7   : > { %v5491_v43 = vpop.xlane.xlu1 %5490  ;;  %v5518_v53 = vsub.f32 %v11181_v1, %v5488_v42  ;;  %v5573_v46 = vsel %vm5461_vm4, %v11253_v41, 0.0  ;;  %5571 = vadd.xlane.f32.xlu0 %v5570_v51 }
 0x2b8   : > { %v5519_v3 = vsub.f32 %v11185_v10, %v5491_v43  ;;  %5574 = vadd.xlane.f32.xlu1 %v5573_v46 }
 0x2b9   : > { %v5542_v48 = vmul.f32 1.442695, %v5518_v53 }
 0x2ba   : > { %v5544_v49 = vmul.f32 1.442695, %v5519_v3 }
 0x2bb   : > { %9789 = vpow2.f32 %v5542_v48  ;;  %v8224_v48 = vld [vmem:[%s11636_s6 + $0x2] ss:$0 sm:$0xff] }
 0x2bc   : > { %9791 = vpow2.f32 %v5544_v49 }
 0x2bd   : > { %v11261_v50 = vpop.eup %9785 }
 0x2be   : > { %v11263_v12 = vpop.eup %9787  ;;  %v5494_v14 = vpop.xlane.xlu0 %5493  ;;  %v5576_v52 = vsel %vm5461_vm4, %v11261_v50, 0.0 }
 0x2bf   : > { %v5497_v1 = vpop.xlane.xlu1 %5496  ;;  %v5520_v31 = vsub.f32 %v11193_v0, %v5494_v14  ;;  %v5579_v54 = vsel %vm5461_vm4, %v11263_v12, 0.0  ;;  %5577 = vadd.xlane.f32.xlu0 %v5576_v52 }
 0x2c0   : > { %v5521_v10 = vsub.f32 %v11197_v27, %v5497_v1  ;;  %5580 = vadd.xlane.f32.xlu1 %v5579_v54  ;;  %v3308_v1 = vadd.f32 %v8224_v48, %v11099_v56 }
 0x2c1   : > { %v5546_v55 = vmul.f32 1.442695, %v5520_v31  ;;  %v8225_v31 = vld [vmem:[%s11636_s6 + $0x3] ss:$0 sm:$0xff] }
 0x2c2   : > { %v5548_v57 = vmul.f32 1.442695, %v5521_v10 }
 0x2c3   : > { %9793 = vpow2.f32 %v5546_v55 }
 0x2c4   : > { %9795 = vpow2.f32 %v5548_v57  ;;  %v8226_v57 = vld [vmem:[%s11636_s6 + $0x4] ss:$0 sm:$0xff] }
 0x2c5   : > { %v11271_v61 = vpop.eup %9789 }
 0x2c6   : > { %v11273_v6 = vpop.eup %9791  ;;  %v5500_v16 = vpop.xlane.xlu0 %5499  ;;  %v5582_v17 = vsel %vm5461_vm4, %v11271_v61, 0.0 }
 0x2c7   : > { %v5503_v0 = vpop.xlane.xlu1 %5502  ;;  %v5522_v32 = vsub.f32 %v11205_v5, %v5500_v16  ;;  %v5585_v21 = vsel %vm5461_vm4, %v11273_v6, 0.0  ;;  %5583 = vadd.xlane.f32.xlu0 %v5582_v17  ;;  %v8227_v17 = vld [vmem:[%s11636_s6 + $0x5] ss:$0 sm:$0xff] }
 0x2c8   : > { %v5523_v27 = vsub.f32 %v11209_v35, %v5503_v0  ;;  %5586 = vadd.xlane.f32.xlu1 %v5585_v21 }
 0x2c9   : > { %v5550_v36 = vmul.f32 1.442695, %v5522_v32 }
 0x2ca   : > { %v5552_v22 = vmul.f32 1.442695, %v5523_v27 }
 0x2cb   : > { %9797 = vpow2.f32 %v5550_v36 }
 0x2cc   : > { %9799 = vpow2.f32 %v5552_v22  ;;  %v8229_v22 = vld [vmem:[%s11636_s6 + $0x7] ss:$0 sm:$0xff] }
 0x2cd   : > { %v11281_v24 = vpop.eup %9793 }
 0x2ce   : > { %v11283_v26 = vpop.eup %9795  ;;  %v5506_v9 = vpop.xlane.xlu0 %5505  ;;  %v5588_v29 = vsel %vm5461_vm4, %v11281_v24, 0.0 }
 0x2cf   : > { %v5509_v5 = vpop.xlane.xlu1 %5508  ;;  %v5524_v30 = vsub.f32 %v11217_v7, %v5506_v9  ;;  %v5591_v45 = vsel %vm5461_vm4, %v11283_v26, 0.0  ;;  %5589 = vadd.xlane.f32.xlu0 %v5588_v29 }
 0x2d0   : > { %v5525_v35 = vsub.f32 %v11221_v44, %v5509_v5  ;;  %5592 = vadd.xlane.f32.xlu1 %v5591_v45  ;;  %v3658_v5 = vadd.f32 %v8229_v22, %v11109_v60 }
 0x2d1   : > { %v5554_v2 = vmul.f32 1.442695, %v5524_v30 }
 0x2d2   : > { %v5556_v47 = vmul.f32 1.442695, %v5525_v35 }
 0x2d3   : > { %9801 = vpow2.f32 %v5554_v2 }
 0x2d4   : > { %9803 = vpow2.f32 %v5556_v47 }
 0x2d5   : > { %v11291_v34 = vpop.eup %9797 }
 0x2d6   : > { %v11293_v37 = vpop.eup %9799  ;;  %v5594_v38 = vsel %vm5461_vm4, %v11291_v34, 0.0 }
 0x2d7   : > { %v5597_v7 = vsel %vm5461_vm4, %v11293_v37, 0.0  ;;  %5595 = vadd.xlane.f32.xlu0 %v5594_v38 }
 0x2d8   : > { %5598 = vadd.xlane.f32.xlu1 %v5597_v7 }
 0x2dd   : > { %v11299_v42 = vpop.eup %9801 }
 0x2de   : > { %v11301_v44 = vpop.eup %9803  ;;  %v5600_v51 = vsel %vm5461_vm4, %v11299_v42, 0.0 }
 0x2df   : > { %v5603_v43 = vsel %vm5461_vm4, %v11301_v44, 0.0  ;;  %5601 = vadd.xlane.f32.xlu0 %v5600_v51 }
 0x2e0   : > { %5604 = vadd.xlane.f32.xlu1 %v5603_v43 }
 0x334   : > { %v5560_v53 = vpop.xlane.xlu0 %5559 }
 0x335   : > { %9805 = vrcp.f32 %v5560_v53 }
 0x338   : > { %v5563_v46 = vpop.xlane.xlu1 %5562 }
 0x339   : > { %9807 = vrcp.f32 %v5563_v46 }
 0x33c   : > { %v5566_v3 = vpop.xlane.xlu0 %5565 }
 0x33d   : > { %9809 = vrcp.f32 %v5566_v3 }
 0x33f   : > { %v9806_v49 = vpop.eup %9805 }
 0x340   : > { %v5622_v14 = vmul.f32 %v9806_v49, %v11231_v8  ;;  %v5569_v52 = vpop.xlane.xlu1 %5568  ;;  %v3378_v8 = vadd.f32 %v8225_v31, %v11101_v59  ;;  %v3448_v59 = vadd.f32 %v8226_v57, %v11103_v63  ;;  %v8228_v63 = vld [vmem:[%s11636_s6 + $0x6] ss:$0 sm:$0xff] }
 0x341   : > { %9811 = vrcp.f32 %v5569_v52  ;;  %v3588_v9 = vadd.f32 %v8228_v63, %v11107_v58  ;;  %v8230_v58 = vld [vmem:[%s11636_s6 + $0x8] ss:$0 sm:$0xff]  ;;  %v6811_v63 = vld [vmem:[%s11637_s7 + $0xa] sm:$0x3] }
 0x342   : > { %9286 = vmatmul.mubr.msk.f32.vlgmr.msra.gmra.mrb[64].mxu0 %vm5461_vm4, %v5622_v14  ;;  %v3728_v2 = vadd.f32 %v8230_v58, %v11111_v13  ;;  %v8232_v13 = vld [vmem:[%s11636_s6 + $0xa] ss:$0 sm:$0xff] }
 0x343   : > { %v9808_v54 = vpop.eup %9807  ;;  %9294 = vmatpush3.msra.mxu0 %v3308_v1  ;;  %9295 = vmatprep.mubr.msk.f32.mxu0 %vm9903_vm0, %v9904_v11  ;;  %v3868_v53 = vadd.f32 %v8232_v13, %v11115_v19  ;;  %v8234_v19 = vld [vmem:[%s11636_s6 + $0xc] ss:$0 sm:$0xff] }
 0x344   : > { %v5623_v10 = vmul.f32 %v9808_v54, %v11237_v39  ;;  %v5572_v55 = vpop.xlane.xlu0 %5571  ;;  %9303 = vmatprep.subr.mxu0 %v9904_v11  ;;  %v4008_v52 = vadd.f32 %v8234_v19, %v11119_v62  ;;  %v8236_v62 = vld [vmem:[%s11636_s6 + $0xe] ss:$0 sm:$0xff] }
 0x345   : > { %v5575_v56 = vpop.xlane.xlu1 %5574  ;;  %9813 = vrcp.f32 %v5572_v55 }
 0x346   : > { %9815 = vrcp.f32 %v5575_v56  ;;  %9291 = vmatmul.mubr.msk.f32.vlgmr.msra.gmra.mrb[64].mxu1 %vm5461_vm4, %v5623_v10 }
 0x347   : > { %v9810_v16 = vpop.eup %9809  ;;  %9299 = vmatpush3.msra.mxu1 %v3378_v8  ;;  %9300 = vmatprep.mubr.msk.f32.mxu1 %vm9903_vm0, %v9904_v11  ;;  %v4148_v8 = vadd.f32 %v8236_v62, %v11123_v18 }
 0x348   : > { %v5624_v39 = vmul.f32 %v9810_v16, %v11241_v28  ;;  %9308 = vmatprep.subr.mxu1 %v9904_v11  ;;  %v3518_v28 = vadd.f32 %v8227_v17, %v11105_v4  ;;  %v6806_v16 = vld [vmem:[%s11637_s7] sm:$0x3]  ;;  %v6809_v17 = vld [vmem:[%s11637_s7 + $0x6] sm:$0x3] }
 0x34a   : > { %9296 = vmatmul.mubr.msk.f32.vlgmr.msra.gmra.mrb[66].mxu0 %vm5461_vm4, %v5624_v39 }
 0x34b   : > { %v9812_v0 = vpop.eup %9811  ;;  %9304 = vmatpush3.msra.mxu0 %v3448_v59  ;;  %9305 = vmatprep.mubr.msk.f32.mxu0 %vm9903_vm0, %v9904_v11 }
 0x34c   : > { %v5625_v32 = vmul.f32 %v9812_v0, %v11247_v33  ;;  %v5578_v21 = vpop.xlane.xlu0 %5577  ;;  %9313 = vmatprep.subr.mxu0 %v9904_v11 }
 0x34d   : > { %v5581_v27 = vpop.xlane.xlu1 %5580  ;;  %9817 = vrcp.f32 %v5578_v21  ;;  %v6810_v21 = vld [vmem:[%s11637_s7 + $0x8] sm:$0x3] }
 0x34e   : > { %9819 = vrcp.f32 %v5581_v27  ;;  %9301 = vmatmul.mubr.msk.f32.vlgmr.msra.gmra.mrb[66].mxu1 %vm5461_vm4, %v5625_v32 }
 0x34f   : > { %v9814_v36 = vpop.eup %9813  ;;  %9309 = vmatpush3.msra.mxu1 %v3518_v28  ;;  %9310 = vmatprep.mubr.msk.f32.mxu1 %vm9903_vm0, %v9904_v11 }
 0x350   : > { %v9816_v33 = vpop.eup %9815  ;;  %v5626_v4 = vmul.f32 %v9814_v36, %v11251_v40  ;;  %9318 = vmatprep.subr.mxu1 %v9904_v11  ;;  %v8231_v40 = vld [vmem:[%s11636_s6 + $0x9] ss:$0 sm:$0xff] }
 0x351   : > { %v5627_v29 = vmul.f32 %v9816_v33, %v11253_v41  ;;  %v3798_v38 = vadd.f32 %v8231_v40, %v11113_v15  ;;  %v6812_v33 = vld [vmem:[%s11637_s7 + $0xc] sm:$0x3] }
 0x352   : > { %9306 = vmatmul.mubr.msk.f32.vlgmr.msra.gmra.mrb[68].mxu0 %vm5461_vm4, %v5626_v4 }
 0x353   : > { %9311 = vmatmul.mubr.msk.f32.vlgmr.msra.gmra.mrb[68].mxu1 %vm5461_vm4, %v5627_v29  ;;  %9314 = vmatpush3.msra.mxu0 %v3588_v9  ;;  %v6813_v9 = vld [vmem:[%s11637_s7 + $0xe] sm:$0x3] }
 0x354   : > { %9319 = vmatpush3.msra.mxu1 %v3658_v5  ;;  %v5584_v30 = vpop.xlane.xlu0 %5583  ;;  %9315 = vmatprep.mubr.msk.f32.mxu0 %vm9903_vm0, %v9904_v11 }
 0x355   : > { %v5587_v45 = vpop.xlane.xlu1 %5586  ;;  %9821 = vrcp.f32 %v5584_v30  ;;  %9320 = vmatprep.mubr.msk.f32.mxu1 %vm9903_vm0, %v9904_v11  ;;  %9323 = vmatprep.subr.mxu0 %v9904_v11 }
 0x356   : > { %9823 = vrcp.f32 %v5587_v45  ;;  %9328 = vmatprep.subr.mxu1 %v9904_v11  ;;  %v6814_v45 = vld [vmem:[%s11637_s7 + $0x10] sm:$0x3] }
 0x357   : > { %v9818_v60 = vpop.eup %9817 }
 0x358   : > { %v9820_v41 = vpop.eup %9819  ;;  %v5628_v35 = vmul.f32 %v9818_v60, %v11261_v50  ;;  %v8233_v50 = vld [vmem:[%s11636_s6 + $0xb] ss:$0 sm:$0xff]  ;;  %v6815_v60 = vld [vmem:[%s11637_s7 + $0x12] sm:$0x3] }
 0x359   : > { %v5629_v47 = vmul.f32 %v9820_v41, %v11263_v12  ;;  %v3938_v3 = vadd.f32 %v8233_v50, %v11117_v20 }
 0x35a   : > { %9316 = vmatmul.mubr.msk.f32.vlgmr.msra.gmra.mrb[70].mxu0 %vm5461_vm4, %v5628_v35 }
 0x35b   : > { %9321 = vmatmul.mubr.msk.f32.vlgmr.msra.gmra.mrb[70].mxu1 %vm5461_vm4, %v5629_v47  ;;  %9324 = vmatpush3.msra.mxu0 %v3728_v2  ;;  %v6816_v2 = vld [vmem:[%s11637_s7 + $0x14] sm:$0x3] }
 0x35c   : > { %9329 = vmatpush3.msra.mxu1 %v3798_v38  ;;  %v5590_v7 = vpop.xlane.xlu0 %5589  ;;  %9325 = vmatprep.mubr.msk.f32.mxu0 %vm9903_vm0, %v9904_v11  ;;  %v6817_v38 = vld [vmem:[%s11637_s7 + $0x16] sm:$0x3] }
 0x35d   : > { %v5593_v51 = vpop.xlane.xlu1 %5592  ;;  %9825 = vrcp.f32 %v5590_v7  ;;  %9330 = vmatprep.mubr.msk.f32.mxu1 %vm9903_vm0, %v9904_v11  ;;  %9333 = vmatprep.subr.mxu0 %v9904_v11 }
 0x35e   : > { %9827 = vrcp.f32 %v5593_v51  ;;  %9338 = vmatprep.subr.mxu1 %v9904_v11 }
 0x35f   : > { %v9822_v15 = vpop.eup %9821 }
 0x360   : > { %v9824_v12 = vpop.eup %9823  ;;  %v5630_v43 = vmul.f32 %v9822_v15, %v11271_v61  ;;  %v8235_v61 = vld [vmem:[%s11636_s6 + $0xd] ss:$0 sm:$0xff]  ;;  %v6818_v15 = vld [vmem:[%s11637_s7 + $0x18] sm:$0x3] }
 0x361   : > { %v5631_v46 = vmul.f32 %v9824_v12, %v11273_v6  ;;  %v4078_v31 = vadd.f32 %v8235_v61, %v11121_v23  ;;  %v6819_v12 = vld [vmem:[%s11637_s7 + $0x1a] sm:$0x3] }
 0x362   : > { %9326 = vmatmul.mubr.msk.f32.vlgmr.msra.gmra.mrb[72].mxu0 %vm5461_vm4, %v5630_v43 }
 0x363   : > { %9331 = vmatmul.mubr.msk.f32.vlgmr.msra.gmra.mrb[72].mxu1 %vm5461_vm4, %v5631_v46  ;;  %9334 = vmatpush3.msra.mxu0 %v3868_v53 }
 0x364   : > { %9339 = vmatpush3.msra.mxu1 %v3938_v3  ;;  %v5596_v48 = vpop.xlane.xlu0 %5595  ;;  %9335 = vmatprep.mubr.msk.f32.mxu0 %vm9903_vm0, %v9904_v11  ;;  %v6820_v3 = vld [vmem:[%s11637_s7 + $0x1c] sm:$0x3] }
 0x365   : > { %v5599_v49 = vpop.xlane.xlu1 %5598  ;;  %9829 = vrcp.f32 %v5596_v48  ;;  %9340 = vmatprep.mubr.msk.f32.mxu1 %vm9903_vm0, %v9904_v11  ;;  %9343 = vmatprep.subr.mxu0 %v9904_v11 }
 0x366   : > { %9831 = vrcp.f32 %v5599_v49  ;;  %9348 = vmatprep.subr.mxu1 %v9904_v11  ;;  %v6821_v49 = vld [vmem:[%s11637_s7 + $0x1e] sm:$0x3] }
 0x367   : > { %v9826_v20 = vpop.eup %9825 }
 0x368   : > { %v9828_v6 = vpop.eup %9827  ;;  %v5632_v14 = vmul.f32 %v9826_v20, %v11281_v24  ;;  %v8237_v24 = vld [vmem:[%s11636_s6 + $0xf] ss:$0 sm:$0xff] }
 0x369   : > { %v5633_v1 = vmul.f32 %v9828_v6, %v11283_v26  ;;  %v4218_v57 = vadd.f32 %v8237_v24, %v11125_v25 }
 0x36a   : > { %9336 = vmatmul.mubr.msk.f32.vlgmr.msra.gmra.mrb[74].mxu0 %vm5461_vm4, %v5632_v14 }
 0x36b   : > { %9341 = vmatmul.mubr.msk.f32.vlgmr.msra.gmra.mrb[74].mxu1 %vm5461_vm4, %v5633_v1  ;;  %9344 = vmatpush3.msra.mxu0 %v4008_v52 }
 0x36c   : > { %9349 = vmatpush3.msra.mxu1 %v4078_v31  ;;  %v5602_v54 = vpop.xlane.xlu0 %5601  ;;  %9345 = vmatprep.mubr.msk.f32.mxu0 %vm9903_vm0, %v9904_v11 }
 0x36d   : > { %v5605_v10 = vpop.xlane.xlu1 %5604  ;;  %9833 = vrcp.f32 %v5602_v54  ;;  %9350 = vmatprep.mubr.msk.f32.mxu1 %vm9903_vm0, %v9904_v11  ;;  %9353 = vmatprep.subr.mxu0 %v9904_v11 }
 0x36e   : > { %9835 = vrcp.f32 %v5605_v10  ;;  %9358 = vmatprep.subr.mxu1 %v9904_v11 }
 0x36f   : > { %v9830_v23 = vpop.eup %9829 }
 0x370   : > { %v9832_v26 = vpop.eup %9831  ;;  %v5634_v55 = vmul.f32 %v9830_v23, %v11291_v34 }
 0x371   : > { %v5635_v56 = vmul.f32 %v9832_v26, %v11293_v37 }
 0x372   : > { %9346 = vmatmul.mubr.msk.f32.vlgmr.msra.gmra.mrb[76].mxu0 %vm5461_vm4, %v5634_v55 }
 0x373   : > { %9351 = vmatmul.mubr.msk.f32.vlgmr.msra.gmra.mrb[76].mxu1 %vm5461_vm4, %v5635_v56  ;;  %9354 = vmatpush3.msra.mxu0 %v4148_v8 }
 0x374   : > { %9359 = vmatpush3.msra.mxu1 %v4218_v57  ;;  %9355 = vmatprep.mubr.msk.f32.mxu0 %vm9903_vm0, %v9904_v11 }
 0x375   : > { %9360 = vmatprep.mubr.msk.f32.mxu1 %vm9903_vm0, %v9904_v11  ;;  %9363 = vmatprep.subr.mxu0 %v9904_v11 }
 0x376   : > { %9368 = vmatprep.subr.mxu1 %v9904_v11 }
 0x377   : > { %v9834_v18 = vpop.eup %9833 }
 0x378   : > { %v9836_v34 = vpop.eup %9835  ;;  %v5636_v25 = vmul.f32 %v9834_v18, %v11299_v42  ;;  %v6807_v42 = vld [vmem:[%s11637_s7 + $0x2] sm:$0x3] }
 0x379   : > { %v5637_v37 = vmul.f32 %v9836_v34, %v11301_v44  ;;  %v6808_v44 = vld [vmem:[%s11637_s7 + $0x4] sm:$0x3] }
 0x37a   : > { %9356 = vmatmul.mubr.msk.f32.vlgmr.msra.gmra.mrb[78].mxu0 %vm5461_vm4, %v5636_v25 }
 0x37b   : > { %9361 = vmatmul.mubr.msk.f32.vlgmr.msra.gmra.mrb[78].mxu1 %vm5461_vm4, %v5637_v37  ;;  %9365 = vmatprep.mubr.msk.f32.mxu0 %vm9903_vm0, %v9904_v11 }
 0x37c   : > { %9370 = vmatprep.mubr.msk.f32.mxu1 %vm9903_vm0, %v9904_v11  ;;  %9364 = vmatpush3.msk.msra.mxu0 %vm6825_vm5, %v6806_v16 }
 0x37d   : > { %9373 = vmatprep.subr.mxu0 %v9904_v11  ;;  %9369 = vmatpush3.msk.msra.mxu1 %vm6825_vm5, %v6807_v42 }
 0x37e   : > { %9378 = vmatprep.subr.mxu1 %v9904_v11 }
 0x415   : > { %v5707_v39 = vpop.f32.mrb[64].mxu0 }
 0x416   : > { %v9287_v59 = vpop.f32.mrb[65].mxu0  ;;  %9366 = vmatmul.mubr.msk.f32.vlgmr.msra.gmra.mrb[80].mxu0 %vm4221_vm2, %v5707_v39 }
 0x417   : > { %9374 = vmatpush3.msk.msra.mxu0 %vm6825_vm5, %v6808_v44  ;;  %9375 = vmatprep.mubr.msk.f32.mxu0 %vm9903_vm0, %v9904_v11 }
 0x418   : > { %9383 = vmatprep.subr.mxu0 %v9904_v11 }
 0x419   : > { %v5780_v0 = vpop.f32.mrb[64].mxu1 }
 0x41a   : > { %v9292_v32 = vpop.f32.mrb[65].mxu1  ;;  %9371 = vmatmul.mubr.msk.f32.vlgmr.msra.gmra.mrb[80].mxu1 %vm4221_vm2, %v5780_v0 }
 0x41b   : > { %9379 = vmatpush3.msk.msra.mxu1 %vm6825_vm5, %v6809_v17  ;;  %9380 = vmatprep.mubr.msk.f32.mxu1 %vm9903_vm0, %v9904_v11 }
 0x41c   : > { %9388 = vmatprep.subr.mxu1 %v9904_v11 }
 0x41d   : > { %v5853_v28 = vpop.f32.mrb[66].mxu0 }
 0x41e   : > { %v9297_v27 = vpop.f32.mrb[67].mxu0  ;;  %9376 = vmatmul.mubr.msk.f32.vlgmr.msra.gmra.mrb[82].mxu0 %vm4221_vm2, %v5853_v28 }
 0x41f   : > { %9384 = vmatpush3.msk.msra.mxu0 %vm6825_vm5, %v6810_v21  ;;  %9385 = vmatprep.mubr.msk.f32.mxu0 %vm9903_vm0, %v9904_v11 }
 0x420   : > { %9393 = vmatprep.subr.mxu0 %v9904_v11 }
 0x421   : > { %v5926_v36 = vpop.f32.mrb[66].mxu1 }
 0x422   : > { %v9302_v22 = vpop.f32.mrb[67].mxu1  ;;  %9381 = vmatmul.mubr.msk.f32.vlgmr.msra.gmra.mrb[82].mxu1 %vm4221_vm2, %v5926_v36 }
 0x423   : > { %9389 = vmatpush3.msk.msra.mxu1 %vm6825_vm5, %v6811_v63  ;;  %9390 = vmatprep.mubr.msk.f32.mxu1 %vm9903_vm0, %v9904_v11 }
 0x424   : > { %9398 = vmatprep.subr.mxu1 %v9904_v11 }
 0x425   : > { %v5999_v4 = vpop.f32.mrb[68].mxu0 }
 0x426   : > { %v6072_v29 = vpop.f32.mrb[68].mxu1  ;;  %v9307_v5 = vpop.f32.mrb[69].mxu0  ;;  %9386 = vmatmul.mubr.msk.f32.vlgmr.msra.gmra.mrb[84].mxu0 %vm4221_vm2, %v5999_v4 }
 0x427   : > { %v9312_v30 = vpop.f32.mrb[69].mxu1  ;;  %9391 = vmatmul.mubr.msk.f32.vlgmr.msra.gmra.mrb[84].mxu1 %vm4221_vm2, %v6072_v29  ;;  %9394 = vmatpush3.msk.msra.mxu0 %vm6825_vm5, %v6812_v33 }
 0x428   : > { %9395 = vmatprep.mubr.msk.f32.mxu0 %vm9903_vm0, %v9904_v11  ;;  %9399 = vmatpush3.msk.msra.mxu1 %vm6825_vm5, %v6813_v9 }
 0x429   : > { %9400 = vmatprep.mubr.msk.f32.mxu1 %vm9903_vm0, %v9904_v11  ;;  %9403 = vmatprep.subr.mxu0 %v9904_v11 }
 0x42a   : > { %9408 = vmatprep.subr.mxu1 %v9904_v11 }
 0x42d   : > { %v6145_v58 = vpop.f32.mrb[70].mxu0 }
 0x42e   : > { %v6218_v40 = vpop.f32.mrb[70].mxu1  ;;  %v9317_v41 = vpop.f32.mrb[71].mxu0  ;;  %9396 = vmatmul.mubr.msk.f32.vlgmr.msra.gmra.mrb[86].mxu0 %vm4221_vm2, %v6145_v58 }
 0x42f   : > { %v9322_v35 = vpop.f32.mrb[71].mxu1  ;;  %9401 = vmatmul.mubr.msk.f32.vlgmr.msra.gmra.mrb[86].mxu1 %vm4221_vm2, %v6218_v40  ;;  %9404 = vmatpush3.msk.msra.mxu0 %vm6825_vm5, %v6814_v45 }
 0x430   : > { %9405 = vmatprep.mubr.msk.f32.mxu0 %vm9903_vm0, %v9904_v11  ;;  %9409 = vmatpush3.msk.msra.mxu1 %vm6825_vm5, %v6815_v60 }
 0x431   : > { %9410 = vmatprep.mubr.msk.f32.mxu1 %vm9903_vm0, %v9904_v11  ;;  %9413 = vmatprep.subr.mxu0 %v9904_v11 }
 0x432   : > { %9418 = vmatprep.subr.mxu1 %v9904_v11 }
 0x435   : > { %v6291_v47 = vpop.f32.mrb[72].mxu0 }
 0x436   : > { %v6364_v7 = vpop.f32.mrb[72].mxu1  ;;  %v9327_v51 = vpop.f32.mrb[73].mxu0  ;;  %9406 = vmatmul.mubr.msk.f32.vlgmr.msra.gmra.mrb[88].mxu0 %vm4221_vm2, %v6291_v47 }
 0x437   : > { %v9332_v13 = vpop.f32.mrb[73].mxu1  ;;  %9411 = vmatmul.mubr.msk.f32.vlgmr.msra.gmra.mrb[88].mxu1 %vm4221_vm2, %v6364_v7  ;;  %9414 = vmatpush3.msk.msra.mxu0 %vm6825_vm5, %v6816_v2 }
 0x438   : > { %9415 = vmatprep.mubr.msk.f32.mxu0 %vm9903_vm0, %v9904_v11  ;;  %9419 = vmatpush3.msk.msra.mxu1 %vm6825_vm5, %v6817_v38 }
 0x439   : > { %9420 = vmatprep.mubr.msk.f32.mxu1 %vm9903_vm0, %v9904_v11  ;;  %9423 = vmatprep.subr.mxu0 %v9904_v11 }
 0x43a   : > { %9428 = vmatprep.subr.mxu1 %v9904_v11 }
 0x43d   : > { %v6437_v50 = vpop.f32.mrb[74].mxu0 }
 0x43e   : > { %v6510_v43 = vpop.f32.mrb[74].mxu1  ;;  %v9337_v53 = vpop.f32.mrb[75].mxu0  ;;  %9416 = vmatmul.mubr.msk.f32.vlgmr.msra.gmra.mrb[90].mxu0 %vm4221_vm2, %v6437_v50 }
 0x43f   : > { %v9342_v46 = vpop.f32.mrb[75].mxu1  ;;  %9421 = vmatmul.mubr.msk.f32.vlgmr.msra.gmra.mrb[90].mxu1 %vm4221_vm2, %v6510_v43  ;;  %9424 = vmatpush3.msk.msra.mxu0 %vm6825_vm5, %v6818_v15 }
 0x440   : > { %9425 = vmatprep.mubr.msk.f32.mxu0 %vm9903_vm0, %v9904_v11  ;;  %9429 = vmatpush3.msk.msra.mxu1 %vm6825_vm5, %v6819_v12 }
 0x441   : > { %9430 = vmatprep.mubr.msk.f32.mxu1 %vm9903_vm0, %v9904_v11  ;;  %9433 = vmatprep.subr.mxu0 %v9904_v11 }
 0x442   : > { %9438 = vmatprep.subr.mxu1 %v9904_v11 }
 0x445   : > { %v6583_v48 = vpop.f32.mrb[76].mxu0 }
 0x446   : > { %v6656_v19 = vpop.f32.mrb[76].mxu1  ;;  %v9347_v20 = vpop.f32.mrb[77].mxu0  ;;  %9426 = vmatmul.mubr.msk.f32.vlgmr.msra.gmra.mrb[92].mxu0 %vm4221_vm2, %v6583_v48 }
 0x447   : > { %v9352_v61 = vpop.f32.mrb[77].mxu1  ;;  %9431 = vmatmul.mubr.msk.f32.vlgmr.msra.gmra.mrb[92].mxu1 %vm4221_vm2, %v6656_v19  ;;  %9434 = vmatpush3.msk.msra.mxu0 %vm6825_vm5, %v6820_v3 }
 0x448   : > { %9435 = vmatprep.mubr.msk.f32.mxu0 %vm9903_vm0, %v9904_v11  ;;  %9439 = vmatpush3.msk.msra.mxu1 %vm6825_vm5, %v6821_v49 }
 0x449   : > { %9440 = vmatprep.mubr.msk.f32.mxu1 %vm9903_vm0, %v9904_v11 }
 0x44d   : > { %v6729_v6 = vpop.f32.mrb[78].mxu0 }
 0x44e   : > { %v6802_v14 = vpop.f32.mrb[78].mxu1  ;;  %v9357_v52 = vpop.f32.mrb[79].mxu0  ;;  %9436 = vmatmul.mubr.msk.f32.vlgmr.msra.gmra.mrb[94].mxu0 %vm4221_vm2, %v6729_v6 }
 0x44f   : > { %v9362_v1 = vpop.f32.mrb[79].mxu1  ;;  %9441 = vmatmul.mubr.msk.f32.vlgmr.msra.gmra.mrb[94].mxu1 %vm4221_vm2, %v6802_v14  ;;  %v8334_v52 = vld [vmem:[%s11638_s8] ss:$0 sm:$0xff] }
 0x4e9   : > { %v6895_v31 = vpop.f32.mrb[80].mxu0 }
 0x4ea   : > { %v9367_v54 = vpop.f32.mrb[81].mxu0  ;;  %v8039_v62 = vsel %vm505_vm1, %v6895_v31, 0.0 }
 0x4ed   : > { %v6971_v10 = vpop.f32.mrb[80].mxu1 }
 0x4ee   : > { %v8040_v23 = vsel %vm505_vm1, %v6971_v10, 0.0  ;;  %v9372_v24 = vpop.f32.mrb[81].mxu1 }
 0x4ef   : > { %v8041_v26 = vadd.f32 %v8040_v23, %v8039_v62 }
 0x4f1   : > { %v7047_v55 = vpop.f32.mrb[82].mxu0 }
 0x4f2   : > { %v8042_v11 = vsel %vm505_vm1, %v7047_v55, 0.0  ;;  %v9377_v8 = vpop.f32.mrb[83].mxu0 }
 0x4f3   : > { %v8043_v56 = vadd.f32 %v8042_v11, %v8041_v26 }
 0x4f5   : > { %v7123_v57 = vpop.f32.mrb[82].mxu1 }
 0x4f6   : > { %v8044_v18 = vsel %vm505_vm1, %v7123_v57, 0.0  ;;  %v9382_v34 = vpop.f32.mrb[83].mxu1 }
 0x4f7   : > { %v8045_v25 = vadd.f32 %v8044_v18, %v8043_v56 }
 0x4f9   : > { %v7199_v37 = vpop.f32.mrb[84].mxu0 }
 0x4fa   : > { %v8046_v16 = vsel %vm505_vm1, %v7199_v37, 0.0  ;;  %v7275_v42 = vpop.f32.mrb[84].mxu1  ;;  %v9387_v44 = vpop.f32.mrb[85].mxu0 }
 0x4fb   : > { %v8047_v39 = vadd.f32 %v8046_v16, %v8045_v25  ;;  %v9392_v59 = vpop.f32.mrb[85].mxu1  ;;  %v8048_v17 = vsel %vm505_vm1, %v7275_v42, 0.0 }
 0x4fd   : > { %v8049_v0 = vadd.f32 %v8048_v17, %v8047_v39 }
 0x501   : > { %v7351_v32 = vpop.f32.mrb[86].mxu0 }
 0x502   : > { %v8050_v21 = vsel %vm505_vm1, %v7351_v32, 0.0  ;;  %v7427_v28 = vpop.f32.mrb[86].mxu1  ;;  %v9397_v27 = vpop.f32.mrb[87].mxu0 }
 0x503   : > { %v8051_v63 = vadd.f32 %v8050_v21, %v8049_v0  ;;  %v9402_v36 = vpop.f32.mrb[87].mxu1  ;;  %v8052_v22 = vsel %vm505_vm1, %v7427_v28, 0.0 }
 0x505   : > { %v8053_v33 = vadd.f32 %v8052_v22, %v8051_v63 }
 0x509   : > { %v7503_v4 = vpop.f32.mrb[88].mxu0 }
 0x50a   : > { %v8054_v9 = vsel %vm505_vm1, %v7503_v4, 0.0  ;;  %v7579_v29 = vpop.f32.mrb[88].mxu1  ;;  %v9407_v5 = vpop.f32.mrb[89].mxu0 }
 0x50b   : > { %v8055_v30 = vadd.f32 %v8054_v9, %v8053_v33  ;;  %v9412_v45 = vpop.f32.mrb[89].mxu1  ;;  %v8056_v58 = vsel %vm505_vm1, %v7579_v29, 0.0 }
 0x50d   : > { %v8057_v60 = vadd.f32 %v8056_v58, %v8055_v30 }
 0x511   : > { %v7655_v40 = vpop.f32.mrb[90].mxu0 }
 0x512   : > { %v8058_v41 = vsel %vm505_vm1, %v7655_v40, 0.0  ;;  %v7731_v35 = vpop.f32.mrb[90].mxu1  ;;  %v9417_v2 = vpop.f32.mrb[91].mxu0 }
 0x513   : > { %v8059_v47 = vadd.f32 %v8058_v41, %v8057_v60  ;;  %v9422_v38 = vpop.f32.mrb[91].mxu1  ;;  %v8060_v7 = vsel %vm505_vm1, %v7731_v35, 0.0 }
 0x515   : > { %v8061_v51 = vadd.f32 %v8060_v7, %v8059_v47 }
 0x519   : > { %v7807_v13 = vpop.f32.mrb[92].mxu0 }
 0x51a   : > { %v8062_v15 = vsel %vm505_vm1, %v7807_v13, 0.0  ;;  %v7883_v50 = vpop.f32.mrb[92].mxu1  ;;  %v9427_v12 = vpop.f32.mrb[93].mxu0 }
 0x51b   : > { %v8063_v43 = vadd.f32 %v8062_v15, %v8061_v51  ;;  %v9432_v53 = vpop.f32.mrb[93].mxu1  ;;  %v8064_v46 = vsel %vm505_vm1, %v7883_v50, 0.0 }
 0x51d   : > { %v8065_v3 = vadd.f32 %v8064_v46, %v8063_v43 }
 0x521   : > { %v7959_v48 = vpop.f32.mrb[94].mxu0 }
 0x522   : > { %v8066_v49 = vsel %vm505_vm1, %v7959_v48, 0.0  ;;  %v8035_v19 = vpop.f32.mrb[94].mxu1  ;;  %v9437_v20 = vpop.f32.mrb[95].mxu0 }
 0x523   : > { %v8067_v61 = vadd.f32 %v8066_v49, %v8065_v3  ;;  %v9442_v6 = vpop.f32.mrb[95].mxu1  ;;  %v8068_v14 = vsel %vm505_vm1, %v8035_v19, 0.0 }
 0x525   : > { %v8069_v1 = vadd.f32 %v8068_v14, %v8067_v61 }
 0x527   : > { %v8077_v31 = vadd.f32 %v8334_v52, %v8069_v1 }
 0x529   : > { %8078 = vst.msk [vmem:[%s323_s21] sm:$0xff] %vm505_vm1, %v8077_v31 }
 0x52a   : > { %9851 = shalt.err (!%p9848_p3)
}
 0x52b   : > { %s9852_s29 = scalar_lea.hbm %s11587_s25, 128  ;;  %s9856_s21 = scalar_lea.hbm %s11639_s9, 256 }
 0x52c   : > { %p9853_p4 = scmp.ne.s32.totalorder %s11587_s25, %s9852_s29  ;;  %p9857_p9 = scmp.lt.u32.totalorder %s11587_s25, %s11639_s9 }
 0x52d   : > { %p9858_p10 = scmp.lt.u32.totalorder %s9856_s21, %s9852_s29  ;;  %p9860_p12 = scmp.lt.u32.totalorder %s9852_s29, %s11587_s25 }
 0x52e   : > { %p9854_p7 = pnand %p9853_p4, %p9994_p5 }
 0x52f   : > { %p9859_p11 = por %p9858_p10, %p9857_p9 }
 0x530   : > { %p9855_p8 = pneg %p9854_p7 }
 0x531   : > { %p9861_p13 = por %p9860_p12, %p9859_p11 }
 0x533   : > { %p9862_p0 = pnand %p9861_p13, %p9855_p8 }
 0x535   : > { %9865 = shalt.err (!%p9862_p0)
}
 0x536   : > { %9731 = dma.vmem_to_hbm [thread:$0]  (%p9994_p5), %s11589_s22, 128, %s11587_s25, %s8080_s27  }
 0x537 PF: > { %p9737_p1 = scmp.ge.s32.totalorder %s9900_s12, 2  ;;  %s8105_s28 = sand.u32 1, %s9888_s30  }
 0x538   : > { %s8106_s13 = scalar_lea.sflag [#allocation3], %s8105_s28 }
 0x539   : > { %p9734_p2 = pnand %p9737_p1, %p9998_p6 }
 0x53b   : > { %9883 = dma.done.wait (!%p9734_p2), %s8106_s13, 128  }
 0x53c   : > { %9885 = vsyncadd (!%p9734_p2), %s8106_s13, 4294967168  ;;  %p19_p3 = scmp.ge.s32.totalorder %s9981_s15, 4   ;;  %s11644_s30 = smov %s9892_s10 }
 0x53d   : > { %s11645_s10 = smov %s9896_s11  ;;  %s11646_s11 = smov %s9992_s18 }
 0x53e   : > { %s11647_s12 = smov %s9981_s15  ;;  %21 = sbr.rel (!%p19_p3) target bundleno = 3 (0x3), region = 91 }
 0x545   :  { %8111 = vsyncpa [#allocation3], 1 }
 0x546   :  { %8113 = vsyncpa [#allocation3 + $0x1], 1 }

</bundles_post_ra>
